<compile_context>
chip_gen: v7x
topology: tpu7x:2x2x1
jax: 0.10.0
libtpu: 0.0.40
codegen_flags: <defaults>
</compile_context>

<pallas_src>
import functools

import jax
import jax.numpy as jnp
import numpy as np
from jax import lax
from jax.experimental import pallas as pl
from jax.experimental.pallas import tpu as pltpu


def lstm_kernel(x_ref, wih_ref, whh_ref, b_ref, wfc_ref, bfc_ref, out_ref):
    """Full LSTM recurrence + final linear head, run entirely in VMEM.

    x_ref   : (T*B, D)    time-major, pre-flattened input
    wih_ref : (D, 4*Hp)   W_ih^T, per-gate zero-padded to Hp      (f32)
    whh_ref : (Hp, 4*Hp)  W_hh^T, per-gate zero-padded to Hp      (bf16 or f32)
    b_ref   : (1, 4*Hp)   b_ih + b_hh, per-gate zero-padded       (f32)
    wfc_ref : (Hp, Op)    W_fc^T, zero-padded                     (f32)
    bfc_ref : (1, Op)
    out_ref : (B, Op)     lane-dense (Op = 128) output; caller slices to O
    """
    TB, D = x_ref.shape
    Hp = whh_ref.shape[0]          # padded hidden size (multiple of 128)
    B = out_ref.shape[0]
    T = TB // B

    # ---- Hoisted input projection: ONE matmul for all timesteps. -----------
    xproj = (jnp.dot(x_ref[...], wih_ref[...],
                     preferred_element_type=jnp.float32)
             + b_ref[...])                                         # (T*B, 4Hp)

    # Per-timestep blocks sliced once, OUTSIDE the recurrence: these are small
    # static sublane slices with no dependence on h/c, so they stay off the
    # recurrent critical path.
    xs = [xproj[t * B:(t + 1) * B, :] for t in range(T)]           # T x (B, 4Hp)

    # Loop-invariant recurrent weight (bf16): halves the per-step weight push;
    # Mosaic can hoist / reuse the RHS across the fully unrolled loop.
    whh = whh_ref[...]                                             # (Hp, 4Hp)
    mxu_dtype = whh.dtype

    h = jnp.zeros((B, Hp), jnp.float32)
    c = jnp.zeros((B, Hp), jnp.float32)

    # ---- Fully unrolled recurrence: one MXU matmul per step on the chain. --
    for t in range(T):                                 # T is static & small
        gates = xs[t] + jnp.dot(h.astype(mxu_dtype), whh,
                                preferred_element_type=jnp.float32)
        # 128-lane-aligned gate slices (PyTorch order i, f, g, o); f32 math.
        i = jax.nn.sigmoid(gates[:, 0 * Hp:1 * Hp])
        f = jax.nn.sigmoid(gates[:, 1 * Hp:2 * Hp])
        g = jnp.tanh(gates[:, 2 * Hp:3 * Hp])
        o = jax.nn.sigmoid(gates[:, 3 * Hp:4 * Hp])
        c = f * c + i * g
        h = o * jnp.tanh(c)

    # ---- Final linear head, lane-dense store. -------------------------------
    out_ref[...] = (jnp.dot(h, wfc_ref[...],
                            preferred_element_type=jnp.float32)
                    + bfc_ref[...])


def _pad_gate_rows(w, H, Hp):
    """Zero-pad each of the 4 gate blocks along axis 0 from H to Hp rows."""
    blocks = jnp.split(w, 4, axis=0)
    pad = [(0, Hp - H)] + [(0, 0)] * (w.ndim - 1)
    return jnp.concatenate([jnp.pad(blk, pad) for blk in blocks], axis=0)


def prepare_params(params, recurrent_dtype=jnp.bfloat16):
    """One-time padding / transpose / cast (hoisted out of the hot path)."""
    H = params["w_hh"].shape[1]
    O = params["w_fc"].shape[0]
    Hp = max(-(-H // 128) * 128, 128)            # pad hidden to 128 lanes/gate
    Op = max(-(-O // 128) * 128, 128)            # lane-dense output

    # Per-gate zero padding keeps padded h/c lanes exactly 0 (with zero init).
    w_ih_p = _pad_gate_rows(params["w_ih"], H, Hp)                     # (4Hp, D)
    w_hh_p = _pad_gate_rows(
        jnp.pad(params["w_hh"], ((0, 0), (0, Hp - H))), H, Hp)         # (4Hp, Hp)
    b_p = _pad_gate_rows(params["b_ih"] + params["b_hh"], H, Hp)       # (4Hp,)
    w_fc_p = jnp.pad(params["w_fc"], ((0, Op - O), (0, Hp - H)))       # (Op, Hp)
    b_fc_p = jnp.pad(params["b_fc"], ((0, Op - O),))                   # (Op,)

    weights = (
        w_ih_p.T.astype(jnp.float32),            # (D, 4Hp)  one-off matmul: f32
        w_hh_p.T.astype(recurrent_dtype),        # (Hp, 4Hp) recurrent: bf16
        b_p[None].astype(jnp.float32),           # (1, 4Hp)
        w_fc_p.T.astype(jnp.float32),            # (Hp, Op)
        b_fc_p[None].astype(jnp.float32),        # (1, Op)
    )
    return weights, O, Op


def make_lstm_classifier(params, recurrent_dtype=jnp.bfloat16):
    """Returns a jitted forward(x: (B,T,D)) -> (B, output_dim). Weights are
    prepared once and become jit constants (no per-call pad/transpose)."""
    (wih_t, whh_t, b, wfc_t, bfc), O, Op = prepare_params(params, recurrent_dtype)

    @jax.jit
    def forward(x):
        B, T, D = x.shape
        # Time-major + flattened in the wrapper (cheap XLA op on the HBM array)
        # so the kernel never reshapes and per-step indexing is leading-axis.
        x_tm = jnp.transpose(x, (1, 0, 2)).reshape(T * B, D)

        out_p = pl.pallas_call(
            lstm_kernel,
            out_shape=jax.ShapeDtypeStruct((B, Op), jnp.float32),
            # No grid: single invocation, whole operands resident in VMEM,
            # no pipelining machinery / double buffering.
            in_specs=[pl.BlockSpec(memory_space=pltpu.MemorySpace.VMEM)] * 6,
            out_specs=pl.BlockSpec(memory_space=pltpu.MemorySpace.VMEM),
        )(x_tm, wih_t, whh_t, b, wfc_t, bfc)

        return out_p[:, :O]

    return forward


def reference(x, params):
    """Pure-JAX reference matching PyTorch nn.LSTM + nn.Linear semantics."""
    B, T, D = x.shape
    H = params["w_hh"].shape[1]
    h = jnp.zeros((B, H), jnp.float32)
    c = jnp.zeros((B, H), jnp.float32)

    def step(carry, x_t):
        h, c = carry
        gates = (x_t @ params["w_ih"].T + h @ params["w_hh"].T
                 + params["b_ih"] + params["b_hh"])
        i, f, g, o = jnp.split(gates, 4, axis=-1)
        i = jax.nn.sigmoid(i)
        f = jax.nn.sigmoid(f)
        g = jnp.tanh(g)
        o = jax.nn.sigmoid(o)
        c = f * c + i * g
        h = o * jnp.tanh(c)
        return (h, c), None

    (h, c), _ = lax.scan(step, (h, c), jnp.transpose(x, (1, 0, 2)))
    return h @ params["w_fc"].T + params["b_fc"]


def init_params(key, input_dim=4, hidden_dim=64, output_dim=3):
    """PyTorch-style uniform(-1/sqrt(H), 1/sqrt(H)) deterministic init."""
    k = 1.0 / np.sqrt(hidden_dim)
    keys = jax.random.split(key, 6)
    u = lambda kk, shape: jax.random.uniform(kk, shape, jnp.float32, -k, k)
    return {
        "w_ih": u(keys[0], (4 * hidden_dim, input_dim)),
        "w_hh": u(keys[1], (4 * hidden_dim, hidden_dim)),
        "b_ih": u(keys[2], (4 * hidden_dim,)),
        "b_hh": u(keys[3], (4 * hidden_dim,)),
        "w_fc": u(keys[4], (output_dim, hidden_dim)),
        "b_fc": u(keys[5], (output_dim,)),
    }


if __name__ == "__main__":
    B, T, D, H, O = 2, 8, 4, 64, 3
    key = jax.random.PRNGKey(0)
    kx, kp = jax.random.split(key)

    x = jax.random.normal(kx, (B, T, D), jnp.float32)
    params = init_params(kp, input_dim=D, hidden_dim=H, output_dim=O)

    ref = jax.block_until_ready(reference(x, params))

    # Structure check with f32 recurrent weights (exact vs. reference).
    fwd_f32 = make_lstm_classifier(params, recurrent_dtype=jnp.float32)
    out_f32 = jax.block_until_ready(fwd_f32(x))
    assert out_f32.shape == (B, O)
    assert np.allclose(np.asarray(out_f32), np.asarray(ref), atol=1e-5, rtol=1e-5)

    # Fast path: bf16 recurrent matmul operands, f32 accumulation & gate math.
    forward = make_lstm_classifier(params)  # recurrent_dtype=bf16
    out = jax.block_until_ready(forward(x))
    assert out.shape == (B, O)
    assert np.allclose(np.asarray(out), np.asarray(ref), atol=2e-2, rtol=2e-2)

    print("KERNEL_OK")
</pallas_src>

<mosaic_0001>
module attributes {stable_mosaic.version = 11 : i64} {
  func.func @lstm_kernel(%arg0: memref<16x4xf32, #tpu.memory_space<vmem>>, %arg1: memref<4x512xf32, #tpu.memory_space<vmem>>, %arg2: memref<128x512xf32, #tpu.memory_space<vmem>>, %arg3: memref<1x512xf32, #tpu.memory_space<vmem>>, %arg4: memref<128x128xf32, #tpu.memory_space<vmem>>, %arg5: memref<1x128xf32, #tpu.memory_space<vmem>>, %arg6: memref<2x128xf32, #tpu.memory_space<vmem>>) attributes {dimension_semantics = [], scalar_prefetch = 0 : i64, scratch_operands = 0 : i64, tpu.core_type = #tpu.core_type<tc>} {
    %c0 = arith.constant 0 : index
    %c0_0 = arith.constant 0 : index
    %0 = vector.load %arg0[%c0, %c0_0] : memref<16x4xf32, #tpu.memory_space<vmem>>, vector<16x4xf32>
    %c0_1 = arith.constant 0 : index
    %c0_2 = arith.constant 0 : index
    %1 = vector.load %arg1[%c0_1, %c0_2] : memref<4x512xf32, #tpu.memory_space<vmem>>, vector<4x512xf32>
    %cst = arith.constant dense<0.000000e+00> : vector<16x512xf32>
    %2 = tpu.matmul %0, %1, %cst {dimension_numbers = #tpu.dot_dimension_numbers<[1], [0], [0], [1], [0, 0, 1, 1], [], []>} : vector<16x4xf32>, vector<4x512xf32>, vector<16x512xf32> -> vector<16x512xf32>
    %c0_3 = arith.constant 0 : index
    %c0_4 = arith.constant 0 : index
    %3 = vector.load %arg3[%c0_3, %c0_4] : memref<1x512xf32, #tpu.memory_space<vmem>>, vector<1x512xf32>
    %4 = vector.broadcast %3 : vector<1x512xf32> to vector<16x512xf32>
    %5 = arith.addf %2, %4 : vector<16x512xf32>
    %6 = vector.extract_strided_slice %5 {offsets = [0, 0], sizes = [2, 512], strides = [1, 1]} : vector<16x512xf32> to vector<2x512xf32>
    %7 = vector.extract_strided_slice %5 {offsets = [2, 0], sizes = [2, 512], strides = [1, 1]} : vector<16x512xf32> to vector<2x512xf32>
    %8 = vector.extract_strided_slice %5 {offsets = [4, 0], sizes = [2, 512], strides = [1, 1]} : vector<16x512xf32> to vector<2x512xf32>
    %9 = vector.extract_strided_slice %5 {offsets = [6, 0], sizes = [2, 512], strides = [1, 1]} : vector<16x512xf32> to vector<2x512xf32>
    %10 = vector.extract_strided_slice %5 {offsets = [8, 0], sizes = [2, 512], strides = [1, 1]} : vector<16x512xf32> to vector<2x512xf32>
    %11 = vector.extract_strided_slice %5 {offsets = [10, 0], sizes = [2, 512], strides = [1, 1]} : vector<16x512xf32> to vector<2x512xf32>
    %12 = vector.extract_strided_slice %5 {offsets = [12, 0], sizes = [2, 512], strides = [1, 1]} : vector<16x512xf32> to vector<2x512xf32>
    %13 = vector.extract_strided_slice %5 {offsets = [14, 0], sizes = [2, 512], strides = [1, 1]} : vector<16x512xf32> to vector<2x512xf32>
    %c0_5 = arith.constant 0 : index
    %c0_6 = arith.constant 0 : index
    %14 = vector.load %arg2[%c0_5, %c0_6] : memref<128x512xf32, #tpu.memory_space<vmem>>, vector<128x512xf32>
    %cst_7 = arith.constant 0.000000e+00 : f32
    %15 = vector.broadcast %cst_7 : f32 to vector<2x128xf32>
    %cst_8 = arith.constant 0.000000e+00 : f32
    %16 = vector.broadcast %cst_8 : f32 to vector<2x128xf32>
    %cst_9 = arith.constant dense<0.000000e+00> : vector<2x512xf32>
    %17 = tpu.matmul %15, %14, %cst_9 {dimension_numbers = #tpu.dot_dimension_numbers<[1], [0], [0], [1], [0, 0, 1, 1], [], []>} : vector<2x128xf32>, vector<128x512xf32>, vector<2x512xf32> -> vector<2x512xf32>
    %18 = arith.addf %6, %17 : vector<2x512xf32>
    %19 = vector.extract_strided_slice %18 {offsets = [0, 0], sizes = [2, 128], strides = [1, 1]} : vector<2x512xf32> to vector<2x128xf32>
    %20 = arith.negf %19 : vector<2x128xf32>
    %21 = math.exp %20 : vector<2x128xf32>
    %cst_10 = arith.constant 1.000000e+00 : f32
    %22 = vector.broadcast %cst_10 : f32 to vector<2x128xf32>
    %23 = arith.addf %22, %21 : vector<2x128xf32>
    %24 = arith.divf %22, %23 : vector<2x128xf32>
    %25 = vector.extract_strided_slice %18 {offsets = [0, 128], sizes = [2, 128], strides = [1, 1]} : vector<2x512xf32> to vector<2x128xf32>
    %26 = arith.negf %25 : vector<2x128xf32>
    %27 = math.exp %26 : vector<2x128xf32>
    %cst_11 = arith.constant 1.000000e+00 : f32
    %28 = vector.broadcast %cst_11 : f32 to vector<2x128xf32>
    %29 = arith.addf %28, %27 : vector<2x128xf32>
    %30 = arith.divf %28, %29 : vector<2x128xf32>
    %31 = vector.extract_strided_slice %18 {offsets = [0, 256], sizes = [2, 128], strides = [1, 1]} : vector<2x512xf32> to vector<2x128xf32>
    %32 = math.tanh %31 : vector<2x128xf32>
    %33 = vector.extract_strided_slice %18 {offsets = [0, 384], sizes = [2, 128], strides = [1, 1]} : vector<2x512xf32> to vector<2x128xf32>
    %34 = arith.negf %33 : vector<2x128xf32>
    %35 = math.exp %34 : vector<2x128xf32>
    %cst_12 = arith.constant 1.000000e+00 : f32
    %36 = vector.broadcast %cst_12 : f32 to vector<2x128xf32>
    %37 = arith.addf %36, %35 : vector<2x128xf32>
    %38 = arith.divf %36, %37 : vector<2x128xf32>
    %39 = arith.mulf %30, %16 : vector<2x128xf32>
    %40 = arith.mulf %24, %32 : vector<2x128xf32>
    %41 = arith.addf %39, %40 : vector<2x128xf32>
    %42 = math.tanh %41 : vector<2x128xf32>
    %43 = arith.mulf %38, %42 : vector<2x128xf32>
    %cst_13 = arith.constant dense<0.000000e+00> : vector<2x512xf32>
    %44 = tpu.matmul %43, %14, %cst_13 {dimension_numbers = #tpu.dot_dimension_numbers<[1], [0], [0], [1], [0, 0, 1, 1], [], []>} : vector<2x128xf32>, vector<128x512xf32>, vector<2x512xf32> -> vector<2x512xf32>
    %45 = arith.addf %7, %44 : vector<2x512xf32>
    %46 = vector.extract_strided_slice %45 {offsets = [0, 0], sizes = [2, 128], strides = [1, 1]} : vector<2x512xf32> to vector<2x128xf32>
    %47 = arith.negf %46 : vector<2x128xf32>
    %48 = math.exp %47 : vector<2x128xf32>
    %cst_14 = arith.constant 1.000000e+00 : f32
    %49 = vector.broadcast %cst_14 : f32 to vector<2x128xf32>
    %50 = arith.addf %49, %48 : vector<2x128xf32>
    %51 = arith.divf %49, %50 : vector<2x128xf32>
    %52 = vector.extract_strided_slice %45 {offsets = [0, 128], sizes = [2, 128], strides = [1, 1]} : vector<2x512xf32> to vector<2x128xf32>
    %53 = arith.negf %52 : vector<2x128xf32>
    %54 = math.exp %53 : vector<2x128xf32>
    %cst_15 = arith.constant 1.000000e+00 : f32
    %55 = vector.broadcast %cst_15 : f32 to vector<2x128xf32>
    %56 = arith.addf %55, %54 : vector<2x128xf32>
    %57 = arith.divf %55, %56 : vector<2x128xf32>
    %58 = vector.extract_strided_slice %45 {offsets = [0, 256], sizes = [2, 128], strides = [1, 1]} : vector<2x512xf32> to vector<2x128xf32>
    %59 = math.tanh %58 : vector<2x128xf32>
    %60 = vector.extract_strided_slice %45 {offsets = [0, 384], sizes = [2, 128], strides = [1, 1]} : vector<2x512xf32> to vector<2x128xf32>
    %61 = arith.negf %60 : vector<2x128xf32>
    %62 = math.exp %61 : vector<2x128xf32>
    %cst_16 = arith.constant 1.000000e+00 : f32
    %63 = vector.broadcast %cst_16 : f32 to vector<2x128xf32>
    %64 = arith.addf %63, %62 : vector<2x128xf32>
    %65 = arith.divf %63, %64 : vector<2x128xf32>
    %66 = arith.mulf %57, %41 : vector<2x128xf32>
    %67 = arith.mulf %51, %59 : vector<2x128xf32>
    %68 = arith.addf %66, %67 : vector<2x128xf32>
    %69 = math.tanh %68 : vector<2x128xf32>
    %70 = arith.mulf %65, %69 : vector<2x128xf32>
    %cst_17 = arith.constant dense<0.000000e+00> : vector<2x512xf32>
    %71 = tpu.matmul %70, %14, %cst_17 {dimension_numbers = #tpu.dot_dimension_numbers<[1], [0], [0], [1], [0, 0, 1, 1], [], []>} : vector<2x128xf32>, vector<128x512xf32>, vector<2x512xf32> -> vector<2x512xf32>
    %72 = arith.addf %8, %71 : vector<2x512xf32>
    %73 = vector.extract_strided_slice %72 {offsets = [0, 0], sizes = [2, 128], strides = [1, 1]} : vector<2x512xf32> to vector<2x128xf32>
    %74 = arith.negf %73 : vector<2x128xf32>
    %75 = math.exp %74 : vector<2x128xf32>
    %cst_18 = arith.constant 1.000000e+00 : f32
    %76 = vector.broadcast %cst_18 : f32 to vector<2x128xf32>
    %77 = arith.addf %76, %75 : vector<2x128xf32>
    %78 = arith.divf %76, %77 : vector<2x128xf32>
    %79 = vector.extract_strided_slice %72 {offsets = [0, 128], sizes = [2, 128], strides = [1, 1]} : vector<2x512xf32> to vector<2x128xf32>
    %80 = arith.negf %79 : vector<2x128xf32>
    %81 = math.exp %80 : vector<2x128xf32>
    %cst_19 = arith.constant 1.000000e+00 : f32
    %82 = vector.broadcast %cst_19 : f32 to vector<2x128xf32>
    %83 = arith.addf %82, %81 : vector<2x128xf32>
    %84 = arith.divf %82, %83 : vector<2x128xf32>
    %85 = vector.extract_strided_slice %72 {offsets = [0, 256], sizes = [2, 128], strides = [1, 1]} : vector<2x512xf32> to vector<2x128xf32>
    %86 = math.tanh %85 : vector<2x128xf32>
    %87 = vector.extract_strided_slice %72 {offsets = [0, 384], sizes = [2, 128], strides = [1, 1]} : vector<2x512xf32> to vector<2x128xf32>
    %88 = arith.negf %87 : vector<2x128xf32>
    %89 = math.exp %88 : vector<2x128xf32>
    %cst_20 = arith.constant 1.000000e+00 : f32
    %90 = vector.broadcast %cst_20 : f32 to vector<2x128xf32>
    %91 = arith.addf %90, %89 : vector<2x128xf32>
    %92 = arith.divf %90, %91 : vector<2x128xf32>
    %93 = arith.mulf %84, %68 : vector<2x128xf32>
    %94 = arith.mulf %78, %86 : vector<2x128xf32>
    %95 = arith.addf %93, %94 : vector<2x128xf32>
    %96 = math.tanh %95 : vector<2x128xf32>
    %97 = arith.mulf %92, %96 : vector<2x128xf32>
    %cst_21 = arith.constant dense<0.000000e+00> : vector<2x512xf32>
    %98 = tpu.matmul %97, %14, %cst_21 {dimension_numbers = #tpu.dot_dimension_numbers<[1], [0], [0], [1], [0, 0, 1, 1], [], []>} : vector<2x128xf32>, vector<128x512xf32>, vector<2x512xf32> -> vector<2x512xf32>
    %99 = arith.addf %9, %98 : vector<2x512xf32>
    %100 = vector.extract_strided_slice %99 {offsets = [0, 0], sizes = [2, 128], strides = [1, 1]} : vector<2x512xf32> to vector<2x128xf32>
    %101 = arith.negf %100 : vector<2x128xf32>
    %102 = math.exp %101 : vector<2x128xf32>
    %cst_22 = arith.constant 1.000000e+00 : f32
    %103 = vector.broadcast %cst_22 : f32 to vector<2x128xf32>
    %104 = arith.addf %103, %102 : vector<2x128xf32>
    %105 = arith.divf %103, %104 : vector<2x128xf32>
    %106 = vector.extract_strided_slice %99 {offsets = [0, 128], sizes = [2, 128], strides = [1, 1]} : vector<2x512xf32> to vector<2x128xf32>
    %107 = arith.negf %106 : vector<2x128xf32>
    %108 = math.exp %107 : vector<2x128xf32>
    %cst_23 = arith.constant 1.000000e+00 : f32
    %109 = vector.broadcast %cst_23 : f32 to vector<2x128xf32>
    %110 = arith.addf %109, %108 : vector<2x128xf32>
    %111 = arith.divf %109, %110 : vector<2x128xf32>
    %112 = vector.extract_strided_slice %99 {offsets = [0, 256], sizes = [2, 128], strides = [1, 1]} : vector<2x512xf32> to vector<2x128xf32>
    %113 = math.tanh %112 : vector<2x128xf32>
    %114 = vector.extract_strided_slice %99 {offsets = [0, 384], sizes = [2, 128], strides = [1, 1]} : vector<2x512xf32> to vector<2x128xf32>
    %115 = arith.negf %114 : vector<2x128xf32>
    %116 = math.exp %115 : vector<2x128xf32>
    %cst_24 = arith.constant 1.000000e+00 : f32
    %117 = vector.broadcast %cst_24 : f32 to vector<2x128xf32>
    %118 = arith.addf %117, %116 : vector<2x128xf32>
    %119 = arith.divf %117, %118 : vector<2x128xf32>
    %120 = arith.mulf %111, %95 : vector<2x128xf32>
    %121 = arith.mulf %105, %113 : vector<2x128xf32>
    %122 = arith.addf %120, %121 : vector<2x128xf32>
    %123 = math.tanh %122 : vector<2x128xf32>
    %124 = arith.mulf %119, %123 : vector<2x128xf32>
    %cst_25 = arith.constant dense<0.000000e+00> : vector<2x512xf32>
    %125 = tpu.matmul %124, %14, %cst_25 {dimension_numbers = #tpu.dot_dimension_numbers<[1], [0], [0], [1], [0, 0, 1, 1], [], []>} : vector<2x128xf32>, vector<128x512xf32>, vector<2x512xf32> -> vector<2x512xf32>
    %126 = arith.addf %10, %125 : vector<2x512xf32>
    %127 = vector.extract_strided_slice %126 {offsets = [0, 0], sizes = [2, 128], strides = [1, 1]} : vector<2x512xf32> to vector<2x128xf32>
    %128 = arith.negf %127 : vector<2x128xf32>
    %129 = math.exp %128 : vector<2x128xf32>
    %cst_26 = arith.constant 1.000000e+00 : f32
    %130 = vector.broadcast %cst_26 : f32 to vector<2x128xf32>
    %131 = arith.addf %130, %129 : vector<2x128xf32>
    %132 = arith.divf %130, %131 : vector<2x128xf32>
    %133 = vector.extract_strided_slice %126 {offsets = [0, 128], sizes = [2, 128], strides = [1, 1]} : vector<2x512xf32> to vector<2x128xf32>
    %134 = arith.negf %133 : vector<2x128xf32>
    %135 = math.exp %134 : vector<2x128xf32>
    %cst_27 = arith.constant 1.000000e+00 : f32
    %136 = vector.broadcast %cst_27 : f32 to vector<2x128xf32>
    %137 = arith.addf %136, %135 : vector<2x128xf32>
    %138 = arith.divf %136, %137 : vector<2x128xf32>
    %139 = vector.extract_strided_slice %126 {offsets = [0, 256], sizes = [2, 128], strides = [1, 1]} : vector<2x512xf32> to vector<2x128xf32>
    %140 = math.tanh %139 : vector<2x128xf32>
    %141 = vector.extract_strided_slice %126 {offsets = [0, 384], sizes = [2, 128], strides = [1, 1]} : vector<2x512xf32> to vector<2x128xf32>
    %142 = arith.negf %141 : vector<2x128xf32>
    %143 = math.exp %142 : vector<2x128xf32>
    %cst_28 = arith.constant 1.000000e+00 : f32
    %144 = vector.broadcast %cst_28 : f32 to vector<2x128xf32>
    %145 = arith.addf %144, %143 : vector<2x128xf32>
    %146 = arith.divf %144, %145 : vector<2x128xf32>
    %147 = arith.mulf %138, %122 : vector<2x128xf32>
    %148 = arith.mulf %132, %140 : vector<2x128xf32>
    %149 = arith.addf %147, %148 : vector<2x128xf32>
    %150 = math.tanh %149 : vector<2x128xf32>
    %151 = arith.mulf %146, %150 : vector<2x128xf32>
    %cst_29 = arith.constant dense<0.000000e+00> : vector<2x512xf32>
    %152 = tpu.matmul %151, %14, %cst_29 {dimension_numbers = #tpu.dot_dimension_numbers<[1], [0], [0], [1], [0, 0, 1, 1], [], []>} : vector<2x128xf32>, vector<128x512xf32>, vector<2x512xf32> -> vector<2x512xf32>
    %153 = arith.addf %11, %152 : vector<2x512xf32>
    %154 = vector.extract_strided_slice %153 {offsets = [0, 0], sizes = [2, 128], strides = [1, 1]} : vector<2x512xf32> to vector<2x128xf32>
    %155 = arith.negf %154 : vector<2x128xf32>
    %156 = math.exp %155 : vector<2x128xf32>
    %cst_30 = arith.constant 1.000000e+00 : f32
    %157 = vector.broadcast %cst_30 : f32 to vector<2x128xf32>
    %158 = arith.addf %157, %156 : vector<2x128xf32>
    %159 = arith.divf %157, %158 : vector<2x128xf32>
    %160 = vector.extract_strided_slice %153 {offsets = [0, 128], sizes = [2, 128], strides = [1, 1]} : vector<2x512xf32> to vector<2x128xf32>
    %161 = arith.negf %160 : vector<2x128xf32>
    %162 = math.exp %161 : vector<2x128xf32>
    %cst_31 = arith.constant 1.000000e+00 : f32
    %163 = vector.broadcast %cst_31 : f32 to vector<2x128xf32>
    %164 = arith.addf %163, %162 : vector<2x128xf32>
    %165 = arith.divf %163, %164 : vector<2x128xf32>
    %166 = vector.extract_strided_slice %153 {offsets = [0, 256], sizes = [2, 128], strides = [1, 1]} : vector<2x512xf32> to vector<2x128xf32>
    %167 = math.tanh %166 : vector<2x128xf32>
    %168 = vector.extract_strided_slice %153 {offsets = [0, 384], sizes = [2, 128], strides = [1, 1]} : vector<2x512xf32> to vector<2x128xf32>
    %169 = arith.negf %168 : vector<2x128xf32>
    %170 = math.exp %169 : vector<2x128xf32>
    %cst_32 = arith.constant 1.000000e+00 : f32
    %171 = vector.broadcast %cst_32 : f32 to vector<2x128xf32>
    %172 = arith.addf %171, %170 : vector<2x128xf32>
    %173 = arith.divf %171, %172 : vector<2x128xf32>
    %174 = arith.mulf %165, %149 : vector<2x128xf32>
    %175 = arith.mulf %159, %167 : vector<2x128xf32>
    %176 = arith.addf %174, %175 : vector<2x128xf32>
    %177 = math.tanh %176 : vector<2x128xf32>
    %178 = arith.mulf %173, %177 : vector<2x128xf32>
    %cst_33 = arith.constant dense<0.000000e+00> : vector<2x512xf32>
    %179 = tpu.matmul %178, %14, %cst_33 {dimension_numbers = #tpu.dot_dimension_numbers<[1], [0], [0], [1], [0, 0, 1, 1], [], []>} : vector<2x128xf32>, vector<128x512xf32>, vector<2x512xf32> -> vector<2x512xf32>
    %180 = arith.addf %12, %179 : vector<2x512xf32>
    %181 = vector.extract_strided_slice %180 {offsets = [0, 0], sizes = [2, 128], strides = [1, 1]} : vector<2x512xf32> to vector<2x128xf32>
    %182 = arith.negf %181 : vector<2x128xf32>
    %183 = math.exp %182 : vector<2x128xf32>
    %cst_34 = arith.constant 1.000000e+00 : f32
    %184 = vector.broadcast %cst_34 : f32 to vector<2x128xf32>
    %185 = arith.addf %184, %183 : vector<2x128xf32>
    %186 = arith.divf %184, %185 : vector<2x128xf32>
    %187 = vector.extract_strided_slice %180 {offsets = [0, 128], sizes = [2, 128], strides = [1, 1]} : vector<2x512xf32> to vector<2x128xf32>
    %188 = arith.negf %187 : vector<2x128xf32>
    %189 = math.exp %188 : vector<2x128xf32>
    %cst_35 = arith.constant 1.000000e+00 : f32
    %190 = vector.broadcast %cst_35 : f32 to vector<2x128xf32>
    %191 = arith.addf %190, %189 : vector<2x128xf32>
    %192 = arith.divf %190, %191 : vector<2x128xf32>
    %193 = vector.extract_strided_slice %180 {offsets = [0, 256], sizes = [2, 128], strides = [1, 1]} : vector<2x512xf32> to vector<2x128xf32>
    %194 = math.tanh %193 : vector<2x128xf32>
    %195 = vector.extract_strided_slice %180 {offsets = [0, 384], sizes = [2, 128], strides = [1, 1]} : vector<2x512xf32> to vector<2x128xf32>
    %196 = arith.negf %195 : vector<2x128xf32>
    %197 = math.exp %196 : vector<2x128xf32>
    %cst_36 = arith.constant 1.000000e+00 : f32
    %198 = vector.broadcast %cst_36 : f32 to vector<2x128xf32>
    %199 = arith.addf %198, %197 : vector<2x128xf32>
    %200 = arith.divf %198, %199 : vector<2x128xf32>
    %201 = arith.mulf %192, %176 : vector<2x128xf32>
    %202 = arith.mulf %186, %194 : vector<2x128xf32>
    %203 = arith.addf %201, %202 : vector<2x128xf32>
    %204 = math.tanh %203 : vector<2x128xf32>
    %205 = arith.mulf %200, %204 : vector<2x128xf32>
    %cst_37 = arith.constant dense<0.000000e+00> : vector<2x512xf32>
    %206 = tpu.matmul %205, %14, %cst_37 {dimension_numbers = #tpu.dot_dimension_numbers<[1], [0], [0], [1], [0, 0, 1, 1], [], []>} : vector<2x128xf32>, vector<128x512xf32>, vector<2x512xf32> -> vector<2x512xf32>
    %207 = arith.addf %13, %206 : vector<2x512xf32>
    %208 = vector.extract_strided_slice %207 {offsets = [0, 0], sizes = [2, 128], strides = [1, 1]} : vector<2x512xf32> to vector<2x128xf32>
    %209 = arith.negf %208 : vector<2x128xf32>
    %210 = math.exp %209 : vector<2x128xf32>
    %cst_38 = arith.constant 1.000000e+00 : f32
    %211 = vector.broadcast %cst_38 : f32 to vector<2x128xf32>
    %212 = arith.addf %211, %210 : vector<2x128xf32>
    %213 = arith.divf %211, %212 : vector<2x128xf32>
    %214 = vector.extract_strided_slice %207 {offsets = [0, 128], sizes = [2, 128], strides = [1, 1]} : vector<2x512xf32> to vector<2x128xf32>
    %215 = arith.negf %214 : vector<2x128xf32>
    %216 = math.exp %215 : vector<2x128xf32>
    %cst_39 = arith.constant 1.000000e+00 : f32
    %217 = vector.broadcast %cst_39 : f32 to vector<2x128xf32>
    %218 = arith.addf %217, %216 : vector<2x128xf32>
    %219 = arith.divf %217, %218 : vector<2x128xf32>
    %220 = vector.extract_strided_slice %207 {offsets = [0, 256], sizes = [2, 128], strides = [1, 1]} : vector<2x512xf32> to vector<2x128xf32>
    %221 = math.tanh %220 : vector<2x128xf32>
    %222 = vector.extract_strided_slice %207 {offsets = [0, 384], sizes = [2, 128], strides = [1, 1]} : vector<2x512xf32> to vector<2x128xf32>
    %223 = arith.negf %222 : vector<2x128xf32>
    %224 = math.exp %223 : vector<2x128xf32>
    %cst_40 = arith.constant 1.000000e+00 : f32
    %225 = vector.broadcast %cst_40 : f32 to vector<2x128xf32>
    %226 = arith.addf %225, %224 : vector<2x128xf32>
    %227 = arith.divf %225, %226 : vector<2x128xf32>
    %228 = arith.mulf %219, %203 : vector<2x128xf32>
    %229 = arith.mulf %213, %221 : vector<2x128xf32>
    %230 = arith.addf %228, %229 : vector<2x128xf32>
    %231 = math.tanh %230 : vector<2x128xf32>
    %232 = arith.mulf %227, %231 : vector<2x128xf32>
    %c0_41 = arith.constant 0 : index
    %c0_42 = arith.constant 0 : index
    %233 = vector.load %arg4[%c0_41, %c0_42] : memref<128x128xf32, #tpu.memory_space<vmem>>, vector<128x128xf32>
    %cst_43 = arith.constant dense<0.000000e+00> : vector<2x128xf32>
    %234 = tpu.matmul %232, %233, %cst_43 {dimension_numbers = #tpu.dot_dimension_numbers<[1], [0], [0], [1], [0, 0, 1, 1], [], []>} : vector<2x128xf32>, vector<128x128xf32>, vector<2x128xf32> -> vector<2x128xf32>
    %c0_44 = arith.constant 0 : index
    %c0_45 = arith.constant 0 : index
    %235 = vector.load %arg5[%c0_44, %c0_45] : memref<1x128xf32, #tpu.memory_space<vmem>>, vector<1x128xf32>
    %236 = vector.broadcast %235 : vector<1x128xf32> to vector<2x128xf32>
    %237 = arith.addf %234, %236 : vector<2x128xf32>
    %c0_46 = arith.constant 0 : index
    %c0_47 = arith.constant 0 : index
    %238 = vector.load %arg6[%c0_46, %c0_47] : memref<2x128xf32, #tpu.memory_space<vmem>>, vector<2x128xf32>
    tpu.vector_store %arg6[%c0_46, %c0_47], %237 {strides = array<i32>} : memref<2x128xf32, #tpu.memory_space<vmem>>, vector<2x128xf32>,
    return
  }
}

</mosaic_0001>

<bundles_post_ra>
// kernel: forward.1
= control target key start
LH: loop header
LB: loop body
LE: loop exit
PB: predicated region body
PF: predicated region fallthrough
CT: control target
= control target key end

     0   :  { %11 = vsyncpa [#allocation3], 0  ;;  %s3256_s0 = inlined_call_operand.vmem [shape: f32[16,4], index: 0, kind: input, shape index: {}]   ;;  %s3257_s1 = inlined_call_operand.vmem [shape: f32[4,512], index: 1, kind: input, shape index: {}]   ;;  %s3258_s2 = inlined_call_operand.hbm [shape: f32[128,512], index: 2, kind: input, shape index: {}]   ;;  %s3259_s3 = inlined_call_operand.vmem [shape: f32[1,512], index: 3, kind: input, shape index: {}]   ;;  %s3260_s4 = inlined_call_operand.hbm [shape: f32[128,128], index: 4, kind: input, shape index: {}]   ;;  %s3261_s5 = inlined_call_operand.vmem [shape: f32[1,128], index: 5, kind: input, shape index: {}]   ;;  %s3262_s6 = inlined_call_operand.hbm [shape: f32[2,128], index: 6, kind: output, shape index: {}]  }
   0x1   :  { %12 = vsyncpa [#allocation6], 0 }
   0x2   :  { %13 = vsyncpa [#allocation4], 0  ;;  %s2730_s21 = smov [#allocation2]   ;;  %s2658_s25 = scalar_lea.hbm %s3258_s2, 8192 }
   0x3   :  { %s23_s22 = sshll.u32 %s2730_s21, 4  ;;  %p2659_p0 = scmp.ne.s32.totalorder %s3258_s2, %s2658_s25  ;;  %s24_s22 = int_to_ptr.vmem [resolvable:$true] %s23_s22 }
   0x4   :  { %p2662_p1 = scmp.lt.u32.totalorder %s2658_s25, %s3258_s2 }
   0x6   :  { %p2664_p2 = pnand %p2662_p1, %p2659_p0 }
   0x8   :  { %2667 = shalt.err (!%p2664_p2)
}
   0x9   :  { %s2668_s30 = scalar_lea.vmem %s24_s22, 8192  ;;  %p2673_p4 = scmp.lt.s32.totalorder %s24_s22, %s24_s22 }
   0xa   :  { %p2669_p3 = scmp.ne.s32.totalorder %s24_s22, %s2668_s30  ;;  %p2674_p5 = scmp.lt.s32.totalorder %s2668_s30, %s2668_s30 }
   0xc   :  { %p2675_p6 = por %p2674_p5, %p2673_p4 }
   0xe   :  { %p2676_p7 = pnand %p2675_p6, %p2669_p3 }
  0x10   :  { %2679 = shalt.err (!%p2676_p7)
}
  0x11   :  { %s2731_s7 = smov 512   ;;  %s2732_s8 = smov 32  }
  0x12   :  { %29 = dma.hbm_to_vmem [thread:$0]  %s3258_s2, 8192, %s24_s22, [#allocation3], %s2731_s7, %s2731_s7, %s2732_s8  }
  0x13   :  { %s2733_s11 = smov [#allocation5]   ;;  %s2680_s15 = scalar_lea.hbm %s3260_s4, 2048 }
  0x14   :  { %s37_s12 = sshll.u32 %s2733_s11, 4  ;;  %p2681_p8 = scmp.ne.s32.totalorder %s3260_s4, %s2680_s15  ;;  %s38_s12 = int_to_ptr.vmem [resolvable:$true] %s37_s12 }
  0x15   :  { %p2684_p9 = scmp.lt.u32.totalorder %s2680_s15, %s3260_s4 }
  0x17   :  { %p2686_p10 = pnand %p2684_p9, %p2681_p8 }
  0x19   :  { %2689 = shalt.err (!%p2686_p10)
}
  0x1a   :  { %s2690_s20 = scalar_lea.vmem %s38_s12, 2048  ;;  %p2695_p12 = scmp.lt.s32.totalorder %s38_s12, %s38_s12 }
  0x1b   :  { %p2691_p11 = scmp.ne.s32.totalorder %s38_s12, %s2690_s20  ;;  %p2696_p13 = scmp.lt.s32.totalorder %s2690_s20, %s2690_s20 }
  0x1d   :  { %p2697_p0 = por %p2696_p13, %p2695_p12 }
  0x1f   :  { %p2698_p1 = pnand %p2697_p0, %p2691_p11 }
  0x21   :  { %2701 = shalt.err (!%p2698_p1)
}
  0x22   :  { %s2734_s2 = smov 128   ;;  %s2735_s21 = smov 8  }
  0x23   :  { %43 = dma.hbm_to_vmem [thread:$0]  %s3260_s4, 2048, %s38_s12, [#allocation6], %s2734_s2, %s2734_s2, %s2735_s21  }
  0x24   :  { %2724 = dma.done.wait [#allocation3], 8192  }
  0x25   :  { %2725 = vsyncadd [#allocation3], 4294959104 }
  0x26   :  { %2726 = dma.done.wait [#allocation6], 2048  }
  0x27   :  { %2727 = vsyncadd [#allocation6], 4294965248  ;;  %v2736_v0 = vmov 0.0   ;;  %v54_v1 = vld [vmem:[%s3257_s1] sm:$0xff]  ;;  %vm89_vm0 = vcmask 1043456   ;;  %v253_v2 = vld [vmem:[#allocation2 + $0x8] sm:$0xff] }
  0x28   :  { %162 = vmatprep.mubr.f32.mxu1 %v2736_v0  ;;  %380 = vmatprep.mubr.f32.mxu0 %v2736_v0  ;;  %v257_v3 = vld [vmem:[#allocation2 + $0x28] sm:$0xff]  ;;  %v80_v4 = vcombine.high %v54_v1, %v54_v1  ;;  %v252_v6 = vld [vmem:[#allocation2] sm:$0xff]  ;;  %vm82_vm1 = vcmask 31744   ;;  %v255_v23 = vld [vmem:[#allocation2 + $0x18] sm:$0xff]  ;;  %vm2738_vm2 = vmmov 0   ;;  %s2739_s8 = smov [#allocation7]  }
  0x29   :  { %v2804_v5 = vpack.c.bf16 %v257_v3, %v253_v2  ;;  %v256_v7 = vld [vmem:[#allocation2 + $0x20] sm:$0xff]  ;;  %v261_v10 = vld [vmem:[#allocation2 + $0x48] sm:$0xff]  ;;  %v259_v24 = vld [vmem:[#allocation2 + $0x38] sm:$0xff]  ;;  %s1887_s9 = sshll.u32 %s2739_s8, 4  ;;  %s1888_s9 = int_to_ptr.vmem [resolvable:$true] %s1887_s9 }
  0x2a   :  { %v52_v8 = vld [vmem:[%s3256_s0] sm:$0xff]  ;;  %v2809_v9 = vpack.c.bf16 %v256_v7, %v252_v6  ;;  %v265_v11 = vld [vmem:[#allocation2 + $0x68] sm:$0xff]  ;;  %1897 = vmatprep.subr.msk.mxu1 %vm89_vm0, %v80_v4  ;;  %v2831_v26 = vpack.c.bf16 %v259_v24, %v255_v23  ;;  %v254_v28 = vld [vmem:[#allocation2 + $0x10] sm:$0xff]  ;;  %s2702_s10 = scalar_lea.vmem %s1888_s9, 32  ;;  %p2707_p3 = scmp.lt.s32.totalorder %s1888_s9, %s1888_s9 }
  0x2b   :  { %v260_v12 = vld [vmem:[#allocation2 + $0x40] sm:$0xff]  ;;  %1983 = vmatprep.subr.bf16.mxu0 %v2804_v5  ;;  %v2813_v13 = vpack.c.bf16 %v265_v11, %v261_v10  ;;  %v55_v15 = vld [vmem:[%s3257_s1 + $0x8] sm:$0xff]  ;;  %1898 = vmatpush1.msk.msra.mxu1 %vm89_vm0, %v54_v1  ;;  %v258_v29 = vld [vmem:[#allocation2 + $0x30] sm:$0xff]  ;;  %p2703_p2 = scmp.ne.s32.totalorder %s1888_s9, %s2702_s10  ;;  %p2708_p4 = scmp.lt.s32.totalorder %s2702_s10, %s2702_s10 }
  0x2c   :  { %v264_v14 = vld [vmem:[#allocation2 + $0x60] sm:$0xff]  ;;  %1985 = vmatpush1.bf16.msra.mxu0 %v2809_v9  ;;  %v81_v17 = vcombine.high %v55_v15, %v55_v15  ;;  %v269_v18 = vld [vmem:[#allocation2 + $0x88] sm:$0xff]  ;;  %1899 = vmatmul.mubr.msk.f32.vlgmr.msra.gmra.mrb[0].mxu1 %vm82_vm1, %v52_v8  ;;  %v263_v32 = vld [vmem:[#allocation2 + $0x58] sm:$0xff]  ;;  %v2843_v37 = vpack.c.bf16 %v258_v29, %v254_v28 }
  0x2d   :  { %v2820_v16 = vpack.c.bf16 %v264_v14, %v260_v12  ;;  %v273_v19 = vld [vmem:[#allocation2 + $0xa8] sm:$0xff]  ;;  %v268_v20 = vld [vmem:[#allocation2 + $0x80] sm:$0xff]  ;;  %1987 = vmatprep.subr.bf16.mxu0 %v2813_v13  ;;  %168 = vmatprep.mubr.f32.mxu1 %v2736_v0  ;;  %v267_v33 = vld [vmem:[#allocation2 + $0x78] sm:$0xff]  ;;  %p2709_p5 = por %p2708_p4, %p2707_p3 }
  0x2e   :  { %v2824_v21 = vpack.c.bf16 %v273_v19, %v269_v18  ;;  %v272_v22 = vld [vmem:[#allocation2 + $0xa0] sm:$0xff]  ;;  %v53_v25 = vld [vmem:[%s3256_s0 + $0x8] sm:$0xff]  ;;  %1901 = vmatprep.subr.msk.mxu1 %vm89_vm0, %v81_v17  ;;  %v2845_v40 = vpack.c.bf16 %v267_v33, %v263_v32  ;;  %v262_v41 = vld [vmem:[#allocation2 + $0x50] sm:$0xff] }
  0x2f   :  { %v277_v27 = vld [vmem:[#allocation2 + $0xc8] sm:$0xff]  ;;  %1902 = vmatpush1.msk.msra.mxu1 %vm89_vm0, %v55_v15  ;;  %v2835_v31 = vpack.c.bf16 %v272_v22, %v268_v20  ;;  %v276_v35 = vld [vmem:[#allocation2 + $0xc0] sm:$0xff]  ;;  %v266_v42 = vld [vmem:[#allocation2 + $0x70] sm:$0xff]  ;;  %p2710_p6 = pnand %p2709_p5, %p2703_p2 }
  0x30   :  { %v281_v30 = vld [vmem:[#allocation2 + $0xe8] sm:$0xff]  ;;  %1989 = vmatpush1.bf16.msra.mxu0 %v2820_v16  ;;  %2015 = vmatprep.subr.bf16.mxu1 %v2831_v26  ;;  %v280_v36 = vld [vmem:[#allocation2 + $0xe0] sm:$0xff]  ;;  %v271_v44 = vld [vmem:[#allocation2 + $0x98] sm:$0xff]  ;;  %v2855_v49 = vpack.c.bf16 %v266_v42, %v262_v41 }
  0x31   :  { %1900 = vmatmul.mubr.msk.f32.gmra.mrb[2].mxu1 %vm82_vm1, %v53_v25  ;;  %1991 = vmatprep.subr.bf16.mxu0 %v2824_v21  ;;  %v2840_v34 = vpack.c.bf16 %v281_v30, %v277_v27  ;;  %v285_v38 = vld [vmem:[#allocation2 + $0x108] sm:$0xff]  ;;  %v2848_v43 = vpack.c.bf16 %v280_v36, %v276_v35  ;;  %v275_v45 = vld [vmem:[#allocation2 + $0xb8] sm:$0xff]  ;;  %v284_v47 = vld [vmem:[#allocation2 + $0x100] sm:$0xff] }
  0x32   :  { %239 = vmatprep.mubr.f32.mxu1 %v2736_v0  ;;  %v289_v39 = vld [vmem:[#allocation2 + $0x128] sm:$0xff]  ;;  %v288_v48 = vld [vmem:[#allocation2 + $0x120] sm:$0xff]  ;;  %v2859_v52 = vpack.c.bf16 %v275_v45, %v271_v44  ;;  %v270_v53 = vld [vmem:[#allocation2 + $0x90] sm:$0xff] }
  0x33   :  { %v2852_v46 = vpack.c.bf16 %v289_v39, %v285_v38  ;;  %v293_v50 = vld [vmem:[#allocation2 + $0x148] sm:$0xff]  ;;  %v274_v54 = vld [vmem:[#allocation2 + $0xb0] sm:$0xff]  ;;  %v2862_v55 = vpack.c.bf16 %v288_v48, %v284_v47  ;;  %v279_v56 = vld [vmem:[#allocation2 + $0xd8] sm:$0xff] }
  0x34   :  { %1993 = vmatpush1.bf16.msra.mxu0 %v2835_v31  ;;  %v297_v51 = vld [vmem:[#allocation2 + $0x168] sm:$0xff]  ;;  %v283_v57 = vld [vmem:[#allocation2 + $0xf8] sm:$0xff]  ;;  %v292_v59 = vld [vmem:[#allocation2 + $0x140] sm:$0xff]  ;;  %v2869_v61 = vpack.c.bf16 %v274_v54, %v270_v53  ;;  %v58_v54 = vlaneseq }
  0x35   :  { %1903 = vmatmul.mubr.msk.f32.vlgmr.msra.gmra.mrb[4].mxu1 %vm82_vm1, %v52_v8  ;;  %1995 = vmatprep.subr.bf16.mxu0 %v2840_v34  ;;  %v2865_v58 = vpack.c.bf16 %v297_v51, %v293_v50  ;;  %v296_v60 = vld [vmem:[#allocation2 + $0x160] sm:$0xff]  ;;  %v301_v62 = vld [vmem:[#allocation2 + $0x188] sm:$0xff]  ;;  %v2873_v1 = vpack.c.bf16 %v283_v57, %v279_v56  ;;  %v278_v2 = vld [vmem:[#allocation2 + $0xd0] sm:$0xff] }
  0x36   :  { %2017 = vmatpush1.bf16.msra.mxu1 %v2843_v37  ;;  %245 = vmatprep.mubr.f32.mxu1 %v2736_v0  ;;  %v305_v63 = vld [vmem:[#allocation2 + $0x1a8] sm:$0xff]  ;;  %v282_v3 = vld [vmem:[#allocation2 + $0xf0] sm:$0xff]  ;;  %v2876_v4 = vpack.c.bf16 %v296_v60, %v292_v59  ;;  %v287_v6 = vld [vmem:[#allocation2 + $0x118] sm:$0xff]  ;;  %v59_v56 = vshrl.u32 %v58_v54, 7 }
  0x37   :  { %2019 = vmatprep.subr.bf16.mxu1 %v2845_v40  ;;  %v291_v7 = vld [vmem:[#allocation2 + $0x138] sm:$0xff]  ;;  %v2879_v8 = vpack.c.bf16 %v305_v63, %v301_v62  ;;  %v300_v10 = vld [vmem:[#allocation2 + $0x180] sm:$0xff]  ;;  %v2882_v12 = vpack.c.bf16 %v282_v3, %v278_v2  ;;  %v309_v14 = vld [vmem:[#allocation2 + $0x1c8] sm:$0xff] }
  0x38   :  { %1997 = vmatpush1.bf16.msra.mxu0 %v2848_v43  ;;  %v304_v11 = vld [vmem:[#allocation2 + $0x1a0] sm:$0xff]  ;;  %v313_v15 = vld [vmem:[#allocation2 + $0x1e8] sm:$0xff]  ;;  %v2885_v17 = vpack.c.bf16 %v291_v7, %v287_v6  ;;  %v286_v18 = vld [vmem:[#allocation2 + $0x110] sm:$0xff]  ;;  %v60_v57 = vsub.s32 0, %v59_v56  ;;  %v64_v62 = vsub.s32 1, %v59_v56 }
  0x39   :  { %1999 = vmatprep.subr.bf16.mxu0 %v2852_v46  ;;  %1904 = vmatmul.mubr.msk.f32.gmra.mrb[6].mxu1 %vm82_vm1, %v53_v25  ;;  %v290_v19 = vld [vmem:[#allocation2 + $0x130] sm:$0xff]  ;;  %v2888_v20 = vpack.c.bf16 %v304_v11, %v300_v10  ;;  %v295_v22 = vld [vmem:[#allocation2 + $0x158] sm:$0xff]  ;;  %v2891_v24 = vpack.c.bf16 %v313_v15, %v309_v14  ;;  %v308_v25 = vld [vmem:[#allocation2 + $0x1c0] sm:$0xff]  ;;  %v68_v14 = vsub.s32 2, %v59_v56 }
  0x3a   :  { %2021 = vmatpush1.bf16.msra.mxu1 %v2855_v49  ;;  %451 = vmatprep.mubr.f32.mxu1 %v2736_v0  ;;  %v299_v23 = vld [vmem:[#allocation2 + $0x178] sm:$0xff]  ;;  %v312_v27 = vld [vmem:[#allocation2 + $0x1e0] sm:$0xff]  ;;  %v2894_v28 = vpack.c.bf16 %v290_v19, %v286_v18  ;;  %v294_v30 = vld [vmem:[#allocation2 + $0x150] sm:$0xff]  ;;  %v72_v18 = vsub.s32 3, %v59_v56 }
  0x3b   :  { %2023 = vmatprep.subr.bf16.mxu1 %v2859_v52  ;;  %v2897_v29 = vpack.c.bf16 %v299_v23, %v295_v22  ;;  %v298_v32 = vld [vmem:[#allocation2 + $0x170] sm:$0xff]  ;;  %v2900_v33 = vpack.c.bf16 %v312_v27, %v308_v25  ;;  %v303_v35 = vld [vmem:[#allocation2 + $0x198] sm:$0xff]  ;;  %v56_v59 = vld [vmem:[%s3259_s3] sm:$0xf] }
  0x3c   :  { %2001 = vmatpush1.bf16.msra.mxu0 %v2862_v55  ;;  %v307_v36 = vld [vmem:[#allocation2 + $0x1b8] sm:$0xff]  ;;  %v2904_v38 = vpack.c.bf16 %v298_v32, %v294_v30  ;;  %v302_v41 = vld [vmem:[#allocation2 + $0x190] sm:$0xff]  ;;  %v61_v2 = vrot.slane %v56_v59, %v60_v57  ;;  %v65_v3 = vrot.slane %v56_v59, %v64_v62  ;;  %v69_v22 = vrot.slane %v56_v59, %v68_v14 }
  0x3d   :  { %2003 = vmatprep.subr.bf16.mxu0 %v2865_v58  ;;  %v2907_v39 = vpack.c.bf16 %v307_v36, %v303_v35  ;;  %v306_v42 = vld [vmem:[#allocation2 + $0x1b0] sm:$0xff]  ;;  %v311_v44 = vld [vmem:[#allocation2 + $0x1d8] sm:$0xff]  ;;  %v73_v23 = vrot.slane %v56_v59, %v72_v18 }
  0x3e   :  { %2025 = vmatpush1.bf16.msra.mxu1 %v2869_v61  ;;  %v315_v45 = vld [vmem:[#allocation2 + $0x1f8] sm:$0xff]  ;;  %v2912_v47 = vpack.c.bf16 %v306_v42, %v302_v41  ;;  %v310_v50 = vld [vmem:[#allocation2 + $0x1d0] sm:$0xff] }
  0x3f   :  { %2027 = vmatprep.subr.bf16.mxu1 %v2873_v1  ;;  %v2916_v48 = vpack.c.bf16 %v315_v45, %v311_v44  ;;  %v314_v51 = vld [vmem:[#allocation2 + $0x1f0] sm:$0xff] }
  0x40   :  { %2005 = vmatpush1.bf16.msra.mxu0 %v2876_v4  ;;  %v2922_v53 = vpack.c.bf16 %v314_v51, %v310_v50 }
  0x41   :  { %2007 = vmatprep.subr.bf16.mxu0 %v2879_v8 }
  0x42   :  { %2029 = vmatpush1.bf16.msra.mxu1 %v2882_v12 }
  0x43   :  { %2031 = vmatprep.subr.bf16.mxu1 %v2885_v17 }
  0x44   :  { %2009 = vmatpush1.bf16.msra.mxu0 %v2888_v20 }
  0x45   :  { %2011 = vmatprep.subr.bf16.mxu0 %v2891_v24 }
  0x46   :  { %2033 = vmatpush1.bf16.msra.mxu1 %v2894_v28 }
  0x47   :  { %2035 = vmatprep.subr.bf16.mxu1 %v2897_v29 }
  0x48   :  { %2013 = vmatpush1.bf16.msra.mxu0 %v2900_v33 }
  0x49   :  { %2047 = vmatprep.subr.bf16.mxu0 %v2804_v5 }
  0x4a   :  { %2037 = vmatpush1.bf16.msra.mxu1 %v2904_v38 }
  0x4b   :  { %381 = vmatmul.mubr.f32.vlgmr.msra.gmra.mrb[0].mxu0 %v2736_v0  ;;  %2039 = vmatprep.subr.bf16.mxu1 %v2907_v39 }
  0x4c   :  { %2049 = vmatpush1.bf16.msra.mxu0 %v2809_v9  ;;  %550 = vmatprep.mubr.f32.mxu0 %v2736_v0 }
  0x4d   :  { %2051 = vmatprep.subr.bf16.mxu0 %v2813_v13 }
  0x4e   :  { %2041 = vmatpush1.bf16.msra.mxu1 %v2912_v47 }
  0x4f   :  { %2043 = vmatprep.subr.bf16.mxu1 %v2916_v48 }
  0x50   :  { %2053 = vmatpush1.bf16.msra.mxu0 %v2820_v16 }
  0x51   :  { %2055 = vmatprep.subr.bf16.mxu0 %v2824_v21 }
  0x52   :  { %2045 = vmatpush1.bf16.msra.mxu1 %v2922_v53 }
  0x53   :  { %2079 = vmatprep.subr.bf16.mxu1 %v2831_v26 }
  0x54   :  { %2057 = vmatpush1.bf16.msra.mxu0 %v2835_v31 }
  0x55   :  { %452 = vmatmul.mubr.f32.vlgmr.msra.gmra.mrb[8].mxu1 %v2736_v0  ;;  %2059 = vmatprep.subr.bf16.mxu0 %v2840_v34 }
  0x56   :  { %2081 = vmatpush1.bf16.msra.mxu1 %v2843_v37  ;;  %621 = vmatprep.mubr.f32.mxu1 %v2736_v0 }
  0x57   :  { %2083 = vmatprep.subr.bf16.mxu1 %v2845_v40 }
  0x58   :  { %2061 = vmatpush1.bf16.msra.mxu0 %v2848_v43 }
  0x59   :  { %2063 = vmatprep.subr.bf16.mxu0 %v2852_v46 }
  0x5a   :  { %2085 = vmatpush1.bf16.msra.mxu1 %v2855_v49 }
  0x5b   :  { %2087 = vmatprep.subr.bf16.mxu1 %v2859_v52 }
  0x5c   :  { %2065 = vmatpush1.bf16.msra.mxu0 %v2862_v55 }
  0x5d   :  { %2067 = vmatprep.subr.bf16.mxu0 %v2865_v58 }
  0x5e   :  { %2089 = vmatpush1.bf16.msra.mxu1 %v2869_v61 }
  0x5f   :  { %2091 = vmatprep.subr.bf16.mxu1 %v2873_v1 }
  0x60   :  { %2069 = vmatpush1.bf16.msra.mxu0 %v2876_v4 }
  0x61   :  { %2071 = vmatprep.subr.bf16.mxu0 %v2879_v8 }
  0x62   :  { %2093 = vmatpush1.bf16.msra.mxu1 %v2882_v12 }
  0x63   :  { %2095 = vmatprep.subr.bf16.mxu1 %v2885_v17 }
  0x64   :  { %2073 = vmatpush1.bf16.msra.mxu0 %v2888_v20 }
  0x65   :  { %2075 = vmatprep.subr.bf16.mxu0 %v2891_v24 }
  0x66   :  { %2097 = vmatpush1.bf16.msra.mxu1 %v2894_v28 }
  0x67   :  { %2099 = vmatprep.subr.bf16.mxu1 %v2897_v29 }
  0x68   :  { %2077 = vmatpush1.bf16.msra.mxu0 %v2900_v33 }
  0x69   :  { %2111 = vmatprep.subr.bf16.mxu0 %v2804_v5 }
  0x6a   :  { %2101 = vmatpush1.bf16.msra.mxu1 %v2904_v38 }
  0x6b   :  { %2103 = vmatprep.subr.bf16.mxu1 %v2907_v39 }
  0x6e   :  { %2105 = vmatpush1.bf16.msra.mxu1 %v2912_v47 }
  0x6f   :  { %2107 = vmatprep.subr.bf16.mxu1 %v2916_v48 }
  0x72   :  { %2109 = vmatpush1.bf16.msra.mxu1 %v2922_v53 }
  0x73   :  { %2143 = vmatprep.subr.bf16.mxu1 %v2831_v26 }
  0xff   :  { %v164_v60 = vpop.f32.mrb[0].mxu1 }
 0x100   :  { %v166_v63 = vpop.f32.mrb[1].mxu1  ;;  %v2970_v35 = vadd.f32 %v164_v60, %v61_v2 }
 0x101   :  { %v2972_v36 = vadd.f32 %v166_v63, %v65_v3 }
 0x104   :  { %v170_v6 = vpop.f32.mrb[2].mxu1 }
 0x105   :  { %v2962_v7 = vadd.f32 %v170_v6, %v61_v2  ;;  %v172_v10 = vpop.f32.mrb[3].mxu1 }
 0x106   :  { %v2964_v11 = vadd.f32 %v172_v10, %v65_v3 }
 0x108   :  { %v241_v15 = vpop.f32.mrb[4].mxu1 }
 0x109   :  { %v243_v19 = vpop.f32.mrb[5].mxu1  ;;  %v2978_v57 = vadd.f32 %v241_v15, %v69_v22 }
 0x10a   :  { %v2976_v54 = vadd.f32 %v243_v19, %v73_v23 }
 0x10c   :  { %v247_v25 = vpop.f32.mrb[6].mxu1 }
 0x10d   :  { %v2966_v27 = vadd.f32 %v247_v25, %v69_v22  ;;  %v249_v30 = vpop.f32.mrb[7].mxu1 }
 0x10e   :  { %v2968_v32 = vadd.f32 %v249_v30, %v73_v23 }
 0x11e   :  { %v382_v41 = vpop.f32.mrb[0].mxu0 }
 0x11f   :  { %v458_v42 = vadd.f32 %v382_v41, %v2970_v35  ;;  %v384_v44 = vpop.f32.mrb[1].mxu0 }
 0x120   :  { %v459_v45 = vadd.f32 %v384_v44, %v2972_v36 }
 0x121   :  { %v1905_v50 = vmul.f32 -1.442695, %v458_v42 }
 0x122   :  { %v1906_v51 = vmul.f32 -1.442695, %v459_v45 }
 0x123   :  { %2530 = vpow2.f32 %v1905_v50 }
 0x124   :  { %2532 = vpow2.f32 %v1906_v51 }
 0x128   :  { %v453_v56 = vpop.f32.mrb[8].mxu1 }
 0x129   :  { %v455_v59 = vpop.f32.mrb[9].mxu1  ;;  %v460_v62 = vadd.f32 %v453_v56, %v2978_v57 }
 0x12a   :  { %v461_v60 = vadd.f32 %v455_v59, %v2976_v54 }
 0x12c   :  { %v1907_v63 = vmul.f32 -1.442695, %v461_v60 }
 0x12d   :  { %v2531_v2 = vpop.eup %2530 }
 0x12e   :  { %v2533_v3 = vpop.eup %2532  ;;  %v465_v6 = vadd.f32 1.0, %v2531_v2  ;;  %2534 = vpow2.f32 %v1907_v63 }
 0x12f   :  { %v471_v10 = vadd.f32 1.0, %v2533_v3  ;;  %2536 = vtanh.f32 %v460_v62 }
 0x130   :  { %2538 = vrcp.f32 %v465_v6 }
 0x131   :  { %2540 = vrcp.f32 %v471_v10 }
 0x138   :  { %v2535_v14 = vpop.eup %2534 }
 0x139   :  { %v2537_v18 = vpop.eup %2536  ;;  %v478_v22 = vadd.f32 1.0, %v2535_v14 }
 0x13a   :  { %v2539_v19 = vpop.eup %2538 }
 0x13b   :  { %v2541_v23 = vpop.eup %2540  ;;  %v482_v15 = vmul.f32 %v2539_v19, %v2537_v18  ;;  %2542 = vrcp.f32 %v478_v22 }
 0x13c   :  { %v481_v25 = vmul.f32 0.0, %v2541_v23 }
 0x13e   :  { %v2982_v30 = vadd.f32 %v482_v15, %v481_v25 }
 0x140   :  { %2544 = vtanh.f32 %v2982_v30 }
 0x145   :  { %v2543_v41 = vpop.eup %2542 }
 0x14a   :  { %v2545_v42 = vpop.eup %2544 }
 0x14b   :  { %v485_v44 = vmul.f32 %v2545_v42, %v2543_v41 }
 0x14d   :  { %551 = vmatmul.mubr.f32.vlgmr.msra.gmra.mrb[2].mxu0 %v485_v44  ;;  %622 = vmatmul.mubr.f32.vlgmr.msra.gmra.mrb[10].mxu1 %v485_v44 }
 0x14e   :  { %2113 = vmatpush1.bf16.msra.mxu0 %v2809_v9  ;;  %2145 = vmatpush1.bf16.msra.mxu1 %v2843_v37 }
 0x14f   :  { %2115 = vmatprep.subr.bf16.mxu0 %v2813_v13  ;;  %2147 = vmatprep.subr.bf16.mxu1 %v2845_v40 }
 0x150   :  { %738 = vmatprep.mubr.f32.mxu0 %v2736_v0  ;;  %809 = vmatprep.mubr.f32.mxu1 %v2736_v0 }
 0x152   :  { %2117 = vmatpush1.bf16.msra.mxu0 %v2820_v16  ;;  %2149 = vmatpush1.bf16.msra.mxu1 %v2855_v49 }
 0x153   :  { %2119 = vmatprep.subr.bf16.mxu0 %v2824_v21  ;;  %2151 = vmatprep.subr.bf16.mxu1 %v2859_v52 }
 0x156   :  { %2121 = vmatpush1.bf16.msra.mxu0 %v2835_v31  ;;  %2153 = vmatpush1.bf16.msra.mxu1 %v2869_v61 }
 0x157   :  { %2123 = vmatprep.subr.bf16.mxu0 %v2840_v34  ;;  %2155 = vmatprep.subr.bf16.mxu1 %v2873_v1 }
 0x15a   :  { %2125 = vmatpush1.bf16.msra.mxu0 %v2848_v43  ;;  %2157 = vmatpush1.bf16.msra.mxu1 %v2882_v12 }
 0x15b   :  { %2127 = vmatprep.subr.bf16.mxu0 %v2852_v46  ;;  %2159 = vmatprep.subr.bf16.mxu1 %v2885_v17 }
 0x15e   :  { %2129 = vmatpush1.bf16.msra.mxu0 %v2862_v55  ;;  %2161 = vmatpush1.bf16.msra.mxu1 %v2894_v28 }
 0x15f   :  { %2131 = vmatprep.subr.bf16.mxu0 %v2865_v58  ;;  %2163 = vmatprep.subr.bf16.mxu1 %v2897_v29 }
 0x162   :  { %2133 = vmatpush1.bf16.msra.mxu0 %v2876_v4  ;;  %2165 = vmatpush1.bf16.msra.mxu1 %v2904_v38 }
 0x163   :  { %2135 = vmatprep.subr.bf16.mxu0 %v2879_v8  ;;  %2167 = vmatprep.subr.bf16.mxu1 %v2907_v39 }
 0x166   :  { %2137 = vmatpush1.bf16.msra.mxu0 %v2888_v20  ;;  %2169 = vmatpush1.bf16.msra.mxu1 %v2912_v47 }
 0x167   :  { %2139 = vmatprep.subr.bf16.mxu0 %v2891_v24  ;;  %2171 = vmatprep.subr.bf16.mxu1 %v2916_v48 }
 0x16a   :  { %2141 = vmatpush1.bf16.msra.mxu0 %v2900_v33  ;;  %2173 = vmatpush1.bf16.msra.mxu1 %v2922_v53 }
 0x16b   :  { %2175 = vmatprep.subr.bf16.mxu0 %v2804_v5  ;;  %2207 = vmatprep.subr.bf16.mxu1 %v2831_v26 }
 0x220   :  { %v552_v45 = vpop.f32.mrb[2].mxu0  ;;  %v623_v50 = vpop.f32.mrb[10].mxu1 }
 0x221   :  { %v632_v51 = vrot.slane %v552_v45, 6  ;;  %v554_v56 = vpop.f32.mrb[3].mxu0  ;;  %v625_v59 = vpop.f32.mrb[11].mxu1  ;;  %v634_v14 = vrot.slane %v623_v50, 6  ;;  %v664_v45 = vrot.slane %v2982_v30, 6 }
 0x222   :  { %v633_v60 = vrot.slane %v554_v56, 6  ;;  %v635_v6 = vrot.slane %v625_v59, 6 }
 0x223   :  { %v640_v62 = vadd.f32 %v632_v51, %v2970_v35  ;;  %v642_v19 = vadd.f32 %v634_v14, %v2978_v57 }
 0x224   :  { %v641_v63 = vadd.f32 %v633_v60, %v2972_v36  ;;  %v643_v10 = vadd.f32 %v635_v6, %v2976_v54 }
 0x225   :  { %v1908_v2 = vmul.f32 -1.442695, %v640_v62 }
 0x226   :  { %v1909_v3 = vmul.f32 -1.442695, %v641_v63  ;;  %v1910_v18 = vmul.f32 -1.442695, %v643_v10 }
 0x227   :  { %2546 = vpow2.f32 %v1908_v2 }
 0x228   :  { %2548 = vpow2.f32 %v1909_v3 }
 0x229   :  { %2550 = vpow2.f32 %v1910_v18 }
 0x22a   :  { %2552 = vtanh.f32 %v642_v19 }
 0x231   :  { %v2547_v23 = vpop.eup %2546 }
 0x232   :  { %v2549_v15 = vpop.eup %2548  ;;  %v647_v22 = vadd.f32 1.0, %v2547_v23 }
 0x233   :  { %v653_v25 = vadd.f32 1.0, %v2549_v15  ;;  %v2551_v41 = vpop.eup %2550 }
 0x234   :  { %2554 = vrcp.f32 %v647_v22  ;;  %v2553_v42 = vpop.eup %2552  ;;  %v660_v59 = vadd.f32 1.0, %v2551_v41 }
 0x235   :  { %2556 = vrcp.f32 %v653_v25 }
 0x236   :  { %2558 = vrcp.f32 %v660_v59 }
 0x23e   :  { %v2555_v44 = vpop.eup %2554 }
 0x23f   :  { %v2557_v51 = vpop.eup %2556  ;;  %v667_v56 = vmul.f32 %v2555_v44, %v2553_v42 }
 0x240   :  { %v666_v50 = vmul.f32 %v2557_v51, %v664_v45  ;;  %v2559_v62 = vpop.eup %2558 }
 0x242   :  { %v3024_v60 = vadd.f32 %v667_v56, %v666_v50 }
 0x244   :  { %2560 = vtanh.f32 %v3024_v60 }
 0x24e   :  { %v2561_v63 = vpop.eup %2560 }
 0x24f   :  { %v670_v2 = vmul.f32 %v2561_v63, %v2559_v62 }
 0x251   :  { %v672_v3 = vrot.slane %v670_v2, 2 }
 0x253   :  { %739 = vmatmul.mubr.f32.vlgmr.msra.gmra.mrb[4].mxu0 %v672_v3  ;;  %810 = vmatmul.mubr.f32.vlgmr.msra.gmra.mrb[12].mxu1 %v672_v3 }
 0x254   :  { %2177 = vmatpush1.bf16.msra.mxu0 %v2809_v9  ;;  %2209 = vmatpush1.bf16.msra.mxu1 %v2843_v37 }
 0x255   :  { %2179 = vmatprep.subr.bf16.mxu0 %v2813_v13  ;;  %2211 = vmatprep.subr.bf16.mxu1 %v2845_v40 }
 0x256   :  { %926 = vmatprep.mubr.f32.mxu0 %v2736_v0  ;;  %997 = vmatprep.mubr.f32.mxu1 %v2736_v0 }
 0x258   :  { %2181 = vmatpush1.bf16.msra.mxu0 %v2820_v16  ;;  %2213 = vmatpush1.bf16.msra.mxu1 %v2855_v49 }
 0x259   :  { %2183 = vmatprep.subr.bf16.mxu0 %v2824_v21  ;;  %2215 = vmatprep.subr.bf16.mxu1 %v2859_v52 }
 0x25c   :  { %2185 = vmatpush1.bf16.msra.mxu0 %v2835_v31  ;;  %2217 = vmatpush1.bf16.msra.mxu1 %v2869_v61 }
 0x25d   :  { %2187 = vmatprep.subr.bf16.mxu0 %v2840_v34  ;;  %2219 = vmatprep.subr.bf16.mxu1 %v2873_v1 }
 0x260   :  { %2189 = vmatpush1.bf16.msra.mxu0 %v2848_v43  ;;  %2221 = vmatpush1.bf16.msra.mxu1 %v2882_v12 }
 0x261   :  { %2191 = vmatprep.subr.bf16.mxu0 %v2852_v46  ;;  %2223 = vmatprep.subr.bf16.mxu1 %v2885_v17 }
 0x264   :  { %2193 = vmatpush1.bf16.msra.mxu0 %v2862_v55  ;;  %2225 = vmatpush1.bf16.msra.mxu1 %v2894_v28 }
 0x265   :  { %2195 = vmatprep.subr.bf16.mxu0 %v2865_v58  ;;  %2227 = vmatprep.subr.bf16.mxu1 %v2897_v29 }
 0x268   :  { %2197 = vmatpush1.bf16.msra.mxu0 %v2876_v4  ;;  %2229 = vmatpush1.bf16.msra.mxu1 %v2904_v38 }
 0x269   :  { %2199 = vmatprep.subr.bf16.mxu0 %v2879_v8  ;;  %2231 = vmatprep.subr.bf16.mxu1 %v2907_v39 }
 0x26c   :  { %2201 = vmatpush1.bf16.msra.mxu0 %v2888_v20  ;;  %2233 = vmatpush1.bf16.msra.mxu1 %v2912_v47 }
 0x26d   :  { %2203 = vmatprep.subr.bf16.mxu0 %v2891_v24  ;;  %2235 = vmatprep.subr.bf16.mxu1 %v2916_v48 }
 0x270   :  { %2205 = vmatpush1.bf16.msra.mxu0 %v2900_v33  ;;  %2237 = vmatpush1.bf16.msra.mxu1 %v2922_v53 }
 0x271   :  { %2239 = vmatprep.subr.bf16.mxu0 %v2804_v5  ;;  %2271 = vmatprep.subr.bf16.mxu1 %v2831_v26 }
 0x326   :  { %v740_v30 = vpop.f32.mrb[4].mxu0  ;;  %v811_v6 = vpop.f32.mrb[12].mxu1 }
 0x327   :  { %v820_v10 = vrot.slane %v740_v30, 4  ;;  %v742_v14 = vpop.f32.mrb[5].mxu0  ;;  %v813_v18 = vpop.f32.mrb[13].mxu1  ;;  %v822_v44 = vrot.slane %v811_v6, 4  ;;  %v852_v30 = vrot.slane %v3024_v60, 6 }
 0x328   :  { %v821_v19 = vrot.slane %v742_v14, 4  ;;  %v823_v41 = vrot.slane %v813_v18, 4 }
 0x329   :  { %v828_v23 = vadd.f32 %v820_v10, %v2970_v35  ;;  %v830_v51 = vadd.f32 %v822_v44, %v2978_v57 }
 0x32a   :  { %v829_v15 = vadd.f32 %v821_v19, %v2972_v36  ;;  %v831_v42 = vadd.f32 %v823_v41, %v2976_v54 }
 0x32b   :  { %v1911_v22 = vmul.f32 -1.442695, %v828_v23 }
 0x32c   :  { %v1912_v25 = vmul.f32 -1.442695, %v829_v15  ;;  %v1913_v45 = vmul.f32 -1.442695, %v831_v42 }
 0x32d   :  { %2562 = vpow2.f32 %v1911_v22 }
 0x32e   :  { %2564 = vpow2.f32 %v1912_v25 }
 0x32f   :  { %2566 = vpow2.f32 %v1913_v45 }
 0x330   :  { %2568 = vtanh.f32 %v830_v51 }
 0x337   :  { %v2563_v56 = vpop.eup %2562 }
 0x338   :  { %v2565_v59 = vpop.eup %2564  ;;  %v835_v50 = vadd.f32 1.0, %v2563_v56 }
 0x339   :  { %v841_v62 = vadd.f32 1.0, %v2565_v59  ;;  %v2567_v63 = vpop.eup %2566 }
 0x33a   :  { %2570 = vrcp.f32 %v835_v50  ;;  %v2569_v2 = vpop.eup %2568  ;;  %v848_v18 = vadd.f32 1.0, %v2567_v63 }
 0x33b   :  { %2572 = vrcp.f32 %v841_v62 }
 0x33c   :  { %2574 = vrcp.f32 %v848_v18 }
 0x344   :  { %v2571_v3 = vpop.eup %2570 }
 0x345   :  { %v2573_v10 = vpop.eup %2572  ;;  %v855_v14 = vmul.f32 %v2571_v3, %v2569_v2 }
 0x346   :  { %v854_v6 = vmul.f32 %v2573_v10, %v852_v30  ;;  %v2575_v23 = vpop.eup %2574 }
 0x348   :  { %v3066_v19 = vadd.f32 %v855_v14, %v854_v6 }
 0x34a   :  { %2576 = vtanh.f32 %v3066_v19 }
 0x354   :  { %v2577_v15 = vpop.eup %2576 }
 0x355   :  { %v858_v22 = vmul.f32 %v2577_v15, %v2575_v23 }
 0x357   :  { %v860_v25 = vrot.slane %v858_v22, 4  ;;  %v1040_v22 = vrot.slane %v3066_v19, 6 }
 0x359   :  { %927 = vmatmul.mubr.f32.vlgmr.msra.gmra.mrb[6].mxu0 %v860_v25  ;;  %998 = vmatmul.mubr.f32.vlgmr.msra.gmra.mrb[14].mxu1 %v860_v25 }
 0x35a   :  { %2241 = vmatpush1.bf16.msra.mxu0 %v2809_v9  ;;  %2273 = vmatpush1.bf16.msra.mxu1 %v2843_v37 }
 0x35b   :  { %2243 = vmatprep.subr.bf16.mxu0 %v2813_v13  ;;  %2275 = vmatprep.subr.bf16.mxu1 %v2845_v40 }
 0x35c   :  { %1114 = vmatprep.mubr.f32.mxu0 %v2736_v0  ;;  %1185 = vmatprep.mubr.f32.mxu1 %v2736_v0 }
 0x35e   :  { %2245 = vmatpush1.bf16.msra.mxu0 %v2820_v16  ;;  %2277 = vmatpush1.bf16.msra.mxu1 %v2855_v49 }
 0x35f   :  { %2247 = vmatprep.subr.bf16.mxu0 %v2824_v21  ;;  %2279 = vmatprep.subr.bf16.mxu1 %v2859_v52 }
 0x362   :  { %2249 = vmatpush1.bf16.msra.mxu0 %v2835_v31  ;;  %2281 = vmatpush1.bf16.msra.mxu1 %v2869_v61 }
 0x363   :  { %2251 = vmatprep.subr.bf16.mxu0 %v2840_v34  ;;  %2283 = vmatprep.subr.bf16.mxu1 %v2873_v1 }
 0x366   :  { %2253 = vmatpush1.bf16.msra.mxu0 %v2848_v43  ;;  %2285 = vmatpush1.bf16.msra.mxu1 %v2882_v12 }
 0x367   :  { %2255 = vmatprep.subr.bf16.mxu0 %v2852_v46  ;;  %2287 = vmatprep.subr.bf16.mxu1 %v2885_v17 }
 0x36a   :  { %2257 = vmatpush1.bf16.msra.mxu0 %v2862_v55  ;;  %2289 = vmatpush1.bf16.msra.mxu1 %v2894_v28 }
 0x36b   :  { %2259 = vmatprep.subr.bf16.mxu0 %v2865_v58  ;;  %2291 = vmatprep.subr.bf16.mxu1 %v2897_v29 }
 0x36e   :  { %2261 = vmatpush1.bf16.msra.mxu0 %v2876_v4  ;;  %2293 = vmatpush1.bf16.msra.mxu1 %v2904_v38 }
 0x36f   :  { %2263 = vmatprep.subr.bf16.mxu0 %v2879_v8  ;;  %2295 = vmatprep.subr.bf16.mxu1 %v2907_v39 }
 0x372   :  { %2265 = vmatpush1.bf16.msra.mxu0 %v2888_v20  ;;  %2297 = vmatpush1.bf16.msra.mxu1 %v2912_v47 }
 0x373   :  { %2267 = vmatprep.subr.bf16.mxu0 %v2891_v24  ;;  %2299 = vmatprep.subr.bf16.mxu1 %v2916_v48 }
 0x376   :  { %2269 = vmatpush1.bf16.msra.mxu0 %v2900_v33  ;;  %2301 = vmatpush1.bf16.msra.mxu1 %v2922_v53 }
 0x377   :  { %2303 = vmatprep.subr.bf16.mxu0 %v2804_v5  ;;  %2335 = vmatprep.subr.bf16.mxu1 %v2831_v26 }
 0x42c   :  { %v928_v60 = vpop.f32.mrb[6].mxu0  ;;  %v999_v41 = vpop.f32.mrb[14].mxu1 }
 0x42d   :  { %v1008_v42 = vrot.slane %v928_v60, 2  ;;  %v930_v44 = vpop.f32.mrb[7].mxu0  ;;  %v1001_v45 = vpop.f32.mrb[15].mxu1  ;;  %v1010_v3 = vrot.slane %v999_v41, 2 }
 0x42e   :  { %v1009_v51 = vrot.slane %v930_v44, 2  ;;  %v1011_v63 = vrot.slane %v1001_v45, 2 }
 0x42f   :  { %v1016_v56 = vadd.f32 %v1008_v42, %v2970_v35  ;;  %v1018_v10 = vadd.f32 %v1010_v3, %v2978_v57 }
 0x430   :  { %v1017_v59 = vadd.f32 %v1009_v51, %v2972_v36  ;;  %v1019_v2 = vadd.f32 %v1011_v63, %v2976_v54 }
 0x431   :  { %v1914_v50 = vmul.f32 -1.442695, %v1016_v56 }
 0x432   :  { %v1915_v62 = vmul.f32 -1.442695, %v1017_v59  ;;  %v1916_v30 = vmul.f32 -1.442695, %v1019_v2 }
 0x433   :  { %2578 = vpow2.f32 %v1914_v50 }
 0x434   :  { %2580 = vpow2.f32 %v1915_v62 }
 0x435   :  { %2582 = vpow2.f32 %v1916_v30 }
 0x436   :  { %2584 = vtanh.f32 %v1018_v10 }
 0x43d   :  { %v2579_v14 = vpop.eup %2578 }
 0x43e   :  { %v2581_v18 = vpop.eup %2580  ;;  %v1023_v6 = vadd.f32 1.0, %v2579_v14 }
 0x43f   :  { %v1029_v23 = vadd.f32 1.0, %v2581_v18  ;;  %v2583_v35 = vpop.eup %2582 }
 0x440   :  { %2586 = vrcp.f32 %v1023_v6  ;;  %v2585_v36 = vpop.eup %2584  ;;  %v1036_v54 = vadd.f32 1.0, %v2583_v35 }
 0x441   :  { %2588 = vrcp.f32 %v1029_v23 }
 0x442   :  { %2590 = vrcp.f32 %v1036_v54 }
 0x44a   :  { %v2587_v15 = vpop.eup %2586 }
 0x44b   :  { %v2589_v25 = vpop.eup %2588  ;;  %v1043_v60 = vmul.f32 %v2587_v15, %v2585_v36 }
 0x44c   :  { %v1042_v41 = vmul.f32 %v2589_v25, %v1040_v22  ;;  %v2591_v57 = vpop.eup %2590 }
 0x44e   :  { %v3108_v42 = vadd.f32 %v1043_v60, %v1042_v41 }
 0x450   :  { %2592 = vtanh.f32 %v3108_v42  ;;  %v1216_v25 = vrot.slane %v3108_v42, 6 }
 0x45a   :  { %v2593_v44 = vpop.eup %2592 }
 0x45b   :  { %v1046_v45 = vmul.f32 %v2593_v44, %v2591_v57 }
 0x45d   :  { %v1048_v51 = vrot.slane %v1046_v45, 6 }
 0x45f   :  { %1115 = vmatmul.mubr.f32.vlgmr.msra.gmra.mrb[8].mxu0 %v1048_v51  ;;  %1186 = vmatmul.mubr.f32.vlgmr.msra.gmra.mrb[16].mxu1 %v1048_v51 }
 0x460   :  { %2305 = vmatpush1.bf16.msra.mxu0 %v2809_v9  ;;  %2337 = vmatpush1.bf16.msra.mxu1 %v2843_v37 }
 0x461   :  { %2307 = vmatprep.subr.bf16.mxu0 %v2813_v13  ;;  %2339 = vmatprep.subr.bf16.mxu1 %v2845_v40 }
 0x462   :  { %1287 = vmatprep.mubr.f32.mxu0 %v2736_v0  ;;  %1358 = vmatprep.mubr.f32.mxu1 %v2736_v0 }
 0x464   :  { %2309 = vmatpush1.bf16.msra.mxu0 %v2820_v16  ;;  %2341 = vmatpush1.bf16.msra.mxu1 %v2855_v49 }
 0x465   :  { %2311 = vmatprep.subr.bf16.mxu0 %v2824_v21  ;;  %2343 = vmatprep.subr.bf16.mxu1 %v2859_v52 }
 0x468   :  { %2313 = vmatpush1.bf16.msra.mxu0 %v2835_v31  ;;  %2345 = vmatpush1.bf16.msra.mxu1 %v2869_v61 }
 0x469   :  { %2315 = vmatprep.subr.bf16.mxu0 %v2840_v34  ;;  %2347 = vmatprep.subr.bf16.mxu1 %v2873_v1 }
 0x46c   :  { %2317 = vmatpush1.bf16.msra.mxu0 %v2848_v43  ;;  %2349 = vmatpush1.bf16.msra.mxu1 %v2882_v12 }
 0x46d   :  { %2319 = vmatprep.subr.bf16.mxu0 %v2852_v46  ;;  %2351 = vmatprep.subr.bf16.mxu1 %v2885_v17 }
 0x470   :  { %2321 = vmatpush1.bf16.msra.mxu0 %v2862_v55  ;;  %2353 = vmatpush1.bf16.msra.mxu1 %v2894_v28 }
 0x471   :  { %2323 = vmatprep.subr.bf16.mxu0 %v2865_v58  ;;  %2355 = vmatprep.subr.bf16.mxu1 %v2897_v29 }
 0x474   :  { %2325 = vmatpush1.bf16.msra.mxu0 %v2876_v4  ;;  %2357 = vmatpush1.bf16.msra.mxu1 %v2904_v38 }
 0x475   :  { %2327 = vmatprep.subr.bf16.mxu0 %v2879_v8  ;;  %2359 = vmatprep.subr.bf16.mxu1 %v2907_v39 }
 0x478   :  { %2329 = vmatpush1.bf16.msra.mxu0 %v2888_v20  ;;  %2361 = vmatpush1.bf16.msra.mxu1 %v2912_v47 }
 0x479   :  { %2331 = vmatprep.subr.bf16.mxu0 %v2891_v24  ;;  %2363 = vmatprep.subr.bf16.mxu1 %v2916_v48 }
 0x47c   :  { %2333 = vmatpush1.bf16.msra.mxu0 %v2900_v33  ;;  %2365 = vmatpush1.bf16.msra.mxu1 %v2922_v53 }
 0x47d   :  { %2367 = vmatprep.subr.bf16.mxu0 %v2804_v5  ;;  %2399 = vmatprep.subr.bf16.mxu1 %v2831_v26 }
 0x532   :  { %v1116_v19 = vpop.f32.mrb[8].mxu0  ;;  %v1187_v56 = vpop.f32.mrb[16].mxu1 }
 0x533   :  { %v1192_v59 = vadd.f32 %v1116_v19, %v2962_v7  ;;  %v1118_v50 = vpop.f32.mrb[9].mxu0  ;;  %v1189_v62 = vpop.f32.mrb[17].mxu1  ;;  %v1194_v14 = vadd.f32 %v1187_v56, %v2966_v27 }
 0x534   :  { %v1193_v63 = vadd.f32 %v1118_v50, %v2964_v11  ;;  %v1195_v30 = vadd.f32 %v1189_v62, %v2968_v32 }
 0x535   :  { %v1917_v2 = vmul.f32 -1.442695, %v1192_v59 }
 0x536   :  { %v1918_v3 = vmul.f32 -1.442695, %v1193_v63  ;;  %v1919_v10 = vmul.f32 -1.442695, %v1195_v30 }
 0x537   :  { %2594 = vpow2.f32 %v1917_v2 }
 0x538   :  { %2596 = vpow2.f32 %v1918_v3 }
 0x539   :  { %2598 = vpow2.f32 %v1919_v10 }
 0x53a   :  { %2600 = vtanh.f32 %v1194_v14 }
 0x541   :  { %v2595_v18 = vpop.eup %2594 }
 0x542   :  { %v2597_v6 = vpop.eup %2596  ;;  %v1199_v23 = vadd.f32 1.0, %v2595_v18 }
 0x543   :  { %v1205_v35 = vadd.f32 1.0, %v2597_v6  ;;  %v2599_v36 = vpop.eup %2598 }
 0x544   :  { %2602 = vrcp.f32 %v1199_v23  ;;  %v2601_v15 = vpop.eup %2600  ;;  %v1212_v41 = vadd.f32 1.0, %v2599_v36 }
 0x545   :  { %2604 = vrcp.f32 %v1205_v35 }
 0x546   :  { %2606 = vrcp.f32 %v1212_v41 }
 0x54e   :  { %v2603_v22 = vpop.eup %2602 }
 0x54f   :  { %v2605_v60 = vpop.eup %2604  ;;  %v1219_v54 = vmul.f32 %v2603_v22, %v2601_v15 }
 0x550   :  { %v1218_v57 = vmul.f32 %v2605_v60, %v1216_v25  ;;  %v2607_v45 = vpop.eup %2606 }
 0x552   :  { %v3150_v44 = vadd.f32 %v1219_v54, %v1218_v57 }
 0x554   :  { %2608 = vtanh.f32 %v3150_v44  ;;  %v1401_v54 = vrot.slane %v3150_v44, 6 }
 0x55e   :  { %v2609_v51 = vpop.eup %2608 }
 0x55f   :  { %v1222_v19 = vmul.f32 %v2609_v51, %v2607_v45 }
 0x561   :  { %1288 = vmatmul.mubr.f32.vlgmr.msra.gmra.mrb[10].mxu0 %v1222_v19  ;;  %1359 = vmatmul.mubr.f32.vlgmr.msra.gmra.mrb[18].mxu1 %v1222_v19 }
 0x562   :  { %2369 = vmatpush1.bf16.msra.mxu0 %v2809_v9  ;;  %2401 = vmatpush1.bf16.msra.mxu1 %v2843_v37 }
 0x563   :  { %2371 = vmatprep.subr.bf16.mxu0 %v2813_v13  ;;  %2403 = vmatprep.subr.bf16.mxu1 %v2845_v40 }
 0x564   :  { %1475 = vmatprep.mubr.f32.mxu0 %v2736_v0  ;;  %1546 = vmatprep.mubr.f32.mxu1 %v2736_v0 }
 0x566   :  { %2373 = vmatpush1.bf16.msra.mxu0 %v2820_v16  ;;  %2405 = vmatpush1.bf16.msra.mxu1 %v2855_v49 }
 0x567   :  { %2375 = vmatprep.subr.bf16.mxu0 %v2824_v21  ;;  %2407 = vmatprep.subr.bf16.mxu1 %v2859_v52 }
 0x56a   :  { %2377 = vmatpush1.bf16.msra.mxu0 %v2835_v31  ;;  %2409 = vmatpush1.bf16.msra.mxu1 %v2869_v61 }
 0x56b   :  { %2379 = vmatprep.subr.bf16.mxu0 %v2840_v34  ;;  %2411 = vmatprep.subr.bf16.mxu1 %v2873_v1 }
 0x56e   :  { %2381 = vmatpush1.bf16.msra.mxu0 %v2848_v43  ;;  %2413 = vmatpush1.bf16.msra.mxu1 %v2882_v12 }
 0x56f   :  { %2383 = vmatprep.subr.bf16.mxu0 %v2852_v46  ;;  %2415 = vmatprep.subr.bf16.mxu1 %v2885_v17 }
 0x572   :  { %2385 = vmatpush1.bf16.msra.mxu0 %v2862_v55  ;;  %2417 = vmatpush1.bf16.msra.mxu1 %v2894_v28 }
 0x573   :  { %2387 = vmatprep.subr.bf16.mxu0 %v2865_v58  ;;  %2419 = vmatprep.subr.bf16.mxu1 %v2897_v29 }
 0x576   :  { %2389 = vmatpush1.bf16.msra.mxu0 %v2876_v4  ;;  %2421 = vmatpush1.bf16.msra.mxu1 %v2904_v38 }
 0x577   :  { %2391 = vmatprep.subr.bf16.mxu0 %v2879_v8  ;;  %2423 = vmatprep.subr.bf16.mxu1 %v2907_v39 }
 0x57a   :  { %2393 = vmatpush1.bf16.msra.mxu0 %v2888_v20  ;;  %2425 = vmatpush1.bf16.msra.mxu1 %v2912_v47 }
 0x57b   :  { %2395 = vmatprep.subr.bf16.mxu0 %v2891_v24  ;;  %2427 = vmatprep.subr.bf16.mxu1 %v2916_v48 }
 0x57e   :  { %2397 = vmatpush1.bf16.msra.mxu0 %v2900_v33  ;;  %2429 = vmatpush1.bf16.msra.mxu1 %v2922_v53 }
 0x57f   :  { %2431 = vmatprep.subr.bf16.mxu0 %v2804_v5  ;;  %2463 = vmatprep.subr.bf16.mxu1 %v2831_v26 }
 0x634   :  { %v1289_v42 = vpop.f32.mrb[10].mxu0  ;;  %v1360_v56 = vpop.f32.mrb[18].mxu1 }
 0x635   :  { %v1369_v59 = vrot.slane %v1289_v42, 6  ;;  %v1291_v50 = vpop.f32.mrb[11].mxu0  ;;  %v1362_v62 = vpop.f32.mrb[19].mxu1  ;;  %v1371_v5 = vrot.slane %v1360_v56, 6 }
 0x636   :  { %v1370_v63 = vrot.slane %v1291_v50, 6  ;;  %v1372_v14 = vrot.slane %v1362_v62, 6 }
 0x637   :  { %v1377_v2 = vadd.f32 %v1369_v59, %v2962_v7  ;;  %v1379_v26 = vadd.f32 %v1371_v5, %v2966_v27  ;;  %v1788_v5 = vld [vmem:[#allocation5 + $0x20] sm:$0xff] }
 0x638   :  { %v1378_v3 = vadd.f32 %v1370_v63, %v2964_v11  ;;  %v1380_v18 = vadd.f32 %v1372_v14, %v2968_v32  ;;  %v1784_v63 = vld [vmem:[#allocation5] sm:$0xff]  ;;  %v1787_v14 = vld [vmem:[#allocation5 + $0x18] sm:$0xff] }
 0x639   :  { %v1920_v30 = vmul.f32 -1.442695, %v1377_v2  ;;  %v1785_v2 = vld [vmem:[#allocation5 + $0x8] sm:$0xff] }
 0x63a   :  { %v1921_v10 = vmul.f32 -1.442695, %v1378_v3  ;;  %v1922_v6 = vmul.f32 -1.442695, %v1380_v18  ;;  %v2495_v3 = vpack.c.bf16 %v1785_v2, %v1784_v63 }
 0x63b   :  { %2610 = vpow2.f32 %v1920_v30  ;;  %v2737_v30 = vmov 0.0|0.0  }
 0x63c   :  { %2612 = vpow2.f32 %v1921_v10  ;;  %v1786_v10 = vld [vmem:[#allocation5 + $0x10] sm:$0xff] }
 0x63d   :  { %2614 = vpow2.f32 %v1922_v6  ;;  %v2498_v18 = vpack.c.bf16 %v1787_v14, %v1786_v10  ;;  %v1789_v6 = vld [vmem:[#allocation5 + $0x28] sm:$0xff] }
 0x63e   :  { %2616 = vtanh.f32 %v1379_v26  ;;  %v2501_v26 = vpack.c.bf16 %v1789_v6, %v1788_v5 }
 0x645   :  { %v2611_v23 = vpop.eup %2610 }
 0x646   :  { %v2613_v35 = vpop.eup %2612  ;;  %v1384_v36 = vadd.f32 1.0, %v2611_v23  ;;  %v1790_v23 = vld [vmem:[#allocation5 + $0x30] sm:$0xff] }
 0x647   :  { %v1390_v15 = vadd.f32 1.0, %v2613_v35  ;;  %v2615_v22 = vpop.eup %2614  ;;  %v1791_v35 = vld [vmem:[#allocation5 + $0x38] sm:$0xff] }
 0x648   :  { %2618 = vrcp.f32 %v1384_v36  ;;  %v2617_v25 = vpop.eup %2616  ;;  %v1397_v45 = vadd.f32 1.0, %v2615_v22  ;;  %v2504_v36 = vpack.c.bf16 %v1791_v35, %v1790_v23  ;;  %v1793_v22 = vld [vmem:[#allocation5 + $0x48] sm:$0xff] }
 0x649   :  { %2620 = vrcp.f32 %v1390_v15  ;;  %v1792_v15 = vld [vmem:[#allocation5 + $0x40] sm:$0xff] }
 0x64a   :  { %2622 = vrcp.f32 %v1397_v45  ;;  %v1797_v45 = vld [vmem:[#allocation5 + $0x68] sm:$0xff] }
 0x652   :  { %v2619_v60 = vpop.eup %2618 }
 0x653   :  { %v2621_v41 = vpop.eup %2620  ;;  %v1404_v57 = vmul.f32 %v2619_v60, %v2617_v25  ;;  %v2507_v25 = vpack.c.bf16 %v1793_v22, %v1792_v15  ;;  %v1794_v60 = vld [vmem:[#allocation5 + $0x50] sm:$0xff] }
 0x654   :  { %v1403_v51 = vmul.f32 %v2621_v41, %v1401_v54  ;;  %v2623_v42 = vpop.eup %2622  ;;  %v1795_v54 = vld [vmem:[#allocation5 + $0x58] sm:$0xff] }
 0x655   :  { %v2510_v41 = vpack.c.bf16 %v1795_v54, %v1794_v60 }
 0x656   :  { %v3192_v19 = vadd.f32 %v1404_v57, %v1403_v51  ;;  %v1796_v57 = vld [vmem:[#allocation5 + $0x60] sm:$0xff] }
 0x657   :  { %v2513_v51 = vpack.c.bf16 %v1797_v45, %v1796_v57 }
 0x658   :  { %2624 = vtanh.f32 %v3192_v19 }
 0x662   :  { %v2625_v56 = vpop.eup %2624 }
 0x663   :  { %v1407_v59 = vmul.f32 %v2625_v56, %v2623_v42  ;;  %v1799_v42 = vld [vmem:[#allocation5 + $0x78] sm:$0xff] }
 0x665   :  { %v1409_v50 = vrot.slane %v1407_v59, 2 }
 0x667   :  { %1476 = vmatmul.mubr.f32.vlgmr.msra.gmra.mrb[12].mxu0 %v1409_v50  ;;  %1547 = vmatmul.mubr.f32.vlgmr.msra.gmra.mrb[20].mxu1 %v1409_v50 }
 0x668   :  { %2433 = vmatpush1.bf16.msra.mxu0 %v2809_v9  ;;  %2465 = vmatpush1.bf16.msra.mxu1 %v2843_v37 }
 0x669   :  { %2435 = vmatprep.subr.bf16.mxu0 %v2813_v13  ;;  %2467 = vmatprep.subr.bf16.mxu1 %v2845_v40 }
 0x66a   :  { %1663 = vmatprep.mubr.f32.mxu0 %v2736_v0  ;;  %1734 = vmatprep.mubr.f32.mxu1 %v2736_v0 }
 0x66c   :  { %2437 = vmatpush1.bf16.msra.mxu0 %v2820_v16  ;;  %2469 = vmatpush1.bf16.msra.mxu1 %v2855_v49 }
 0x66d   :  { %2439 = vmatprep.subr.bf16.mxu0 %v2824_v21  ;;  %2471 = vmatprep.subr.bf16.mxu1 %v2859_v52 }
 0x670   :  { %2441 = vmatpush1.bf16.msra.mxu0 %v2835_v31  ;;  %2473 = vmatpush1.bf16.msra.mxu1 %v2869_v61 }
 0x671   :  { %2443 = vmatprep.subr.bf16.mxu0 %v2840_v34  ;;  %2475 = vmatprep.subr.bf16.mxu1 %v2873_v1 }
 0x674   :  { %2445 = vmatpush1.bf16.msra.mxu0 %v2848_v43  ;;  %2477 = vmatpush1.bf16.msra.mxu1 %v2882_v12 }
 0x675   :  { %2447 = vmatprep.subr.bf16.mxu0 %v2852_v46  ;;  %2479 = vmatprep.subr.bf16.mxu1 %v2885_v17 }
 0x678   :  { %2449 = vmatpush1.bf16.msra.mxu0 %v2862_v55  ;;  %2481 = vmatpush1.bf16.msra.mxu1 %v2894_v28  ;;  %v1589_v28 = vrot.slane %v3192_v19, 6  ;;  %v1798_v19 = vld [vmem:[#allocation5 + $0x70] sm:$0xff] }
 0x679   :  { %2451 = vmatprep.subr.bf16.mxu0 %v2865_v58  ;;  %2483 = vmatprep.subr.bf16.mxu1 %v2897_v29  ;;  %v2516_v56 = vpack.c.bf16 %v1799_v42, %v1798_v19 }
 0x67c   :  { %2453 = vmatpush1.bf16.msra.mxu0 %v2876_v4  ;;  %2485 = vmatpush1.bf16.msra.mxu1 %v2904_v38 }
 0x67d   :  { %2455 = vmatprep.subr.bf16.mxu0 %v2879_v8  ;;  %2487 = vmatprep.subr.bf16.mxu1 %v2907_v39 }
 0x680   :  { %2457 = vmatpush1.bf16.msra.mxu0 %v2888_v20  ;;  %2489 = vmatpush1.bf16.msra.mxu1 %v2912_v47 }
 0x681   :  { %2459 = vmatprep.subr.bf16.mxu0 %v2891_v24  ;;  %2491 = vmatprep.subr.bf16.mxu1 %v2916_v48 }
 0x684   :  { %2461 = vmatpush1.bf16.msra.mxu0 %v2900_v33  ;;  %2493 = vmatpush1.bf16.msra.mxu1 %v2922_v53 }
 0x685   :  { %2494 = vmatprep.subr.bf16.mxu0 %v2737_v30 }
 0x73a   :  { %v1477_v9 = vpop.f32.mrb[12].mxu0  ;;  %v1548_v13 = vpop.f32.mrb[20].mxu1 }
 0x73b   :  { %v1557_v16 = vrot.slane %v1477_v9, 4  ;;  %v1479_v21 = vpop.f32.mrb[13].mxu0  ;;  %v1550_v31 = vpop.f32.mrb[21].mxu1  ;;  %v1559_v55 = vrot.slane %v1548_v13, 4 }
 0x73c   :  { %v1558_v34 = vrot.slane %v1479_v21, 4  ;;  %v1560_v49 = vrot.slane %v1550_v31, 4 }
 0x73d   :  { %v1565_v37 = vadd.f32 %v1557_v16, %v2962_v7  ;;  %v1567_v61 = vadd.f32 %v1559_v55, %v2966_v27 }
 0x73e   :  { %v1566_v40 = vadd.f32 %v1558_v34, %v2964_v11  ;;  %v1568_v52 = vadd.f32 %v1560_v49, %v2968_v32 }
 0x73f   :  { %v1923_v43 = vmul.f32 -1.442695, %v1565_v37 }
 0x740   :  { %v1924_v46 = vmul.f32 -1.442695, %v1566_v40  ;;  %v1925_v58 = vmul.f32 -1.442695, %v1568_v52 }
 0x741   :  { %2626 = vpow2.f32 %v1923_v43 }
 0x742   :  { %2628 = vpow2.f32 %v1924_v46 }
 0x743   :  { %2630 = vpow2.f32 %v1925_v58 }
 0x744   :  { %2632 = vtanh.f32 %v1567_v61 }
 0x74b   :  { %v2627_v1 = vpop.eup %2626 }
 0x74c   :  { %v2629_v4 = vpop.eup %2628  ;;  %v1572_v8 = vadd.f32 1.0, %v2627_v1 }
 0x74d   :  { %v1578_v12 = vadd.f32 1.0, %v2629_v4  ;;  %v2631_v17 = vpop.eup %2630 }
 0x74e   :  { %2634 = vrcp.f32 %v1572_v8  ;;  %v2633_v20 = vpop.eup %2632  ;;  %v1585_v38 = vadd.f32 1.0, %v2631_v17 }
 0x74f   :  { %2636 = vrcp.f32 %v1578_v12 }
 0x750   :  { %2638 = vrcp.f32 %v1585_v38  ;;  %v1929_v38 = vld [vmem:[%s3261_s5] ss:$0 sm:$0xff] }
 0x758   :  { %v2635_v24 = vpop.eup %2634 }
 0x759   :  { %v2637_v29 = vpop.eup %2636  ;;  %v1592_v33 = vmul.f32 %v2635_v24, %v2633_v20 }
 0x75a   :  { %v1591_v39 = vmul.f32 %v2637_v29, %v1589_v28  ;;  %v2639_v48 = vpop.eup %2638 }
 0x75c   :  { %v3232_v47 = vadd.f32 %v1592_v33, %v1591_v39 }
 0x75e   :  { %2640 = vtanh.f32 %v3232_v47  ;;  %v1777_v8 = vrot.slane %v3232_v47, 6 }
 0x768   :  { %v2641_v53 = vpop.eup %2640 }
 0x769   :  { %v1595_v44 = vmul.f32 %v2641_v53, %v2639_v48 }
 0x76b   :  { %v1597_v62 = vrot.slane %v1595_v44, 4 }
 0x76d   :  { %1664 = vmatmul.mubr.f32.vlgmr.msra.gmra.mrb[14].mxu0 %v1597_v62  ;;  %1735 = vmatmul.mubr.f32.vlgmr.msra.gmra.mrb[22].mxu1 %v1597_v62 }
 0x76e   :  { %2496 = vmatpush3.bf16.msra.mxu0 %v2495_v3  ;;  %1979 = vmatprep.mubr.msk.f32.mxu0 %vm2738_vm2, %v2736_v0 }
 0x76f   :  { %2497 = vmatprep.subr.bf16.mxu0 %v2737_v30 }
 0x772   :  { %2499 = vmatpush3.bf16.msra.mxu0 %v2498_v18 }
 0x773   :  { %2500 = vmatprep.subr.bf16.mxu0 %v2737_v30 }
 0x776   :  { %2502 = vmatpush3.bf16.msra.mxu0 %v2501_v26 }
 0x777   :  { %2503 = vmatprep.subr.bf16.mxu0 %v2737_v30 }
 0x77a   :  { %2505 = vmatpush3.bf16.msra.mxu0 %v2504_v36 }
 0x77b   :  { %2506 = vmatprep.subr.bf16.mxu0 %v2737_v30 }
 0x77e   :  { %2508 = vmatpush3.bf16.msra.mxu0 %v2507_v25 }
 0x77f   :  { %2509 = vmatprep.subr.bf16.mxu0 %v2737_v30 }
 0x782   :  { %2511 = vmatpush3.bf16.msra.mxu0 %v2510_v41 }
 0x783   :  { %2512 = vmatprep.subr.bf16.mxu0 %v2737_v30 }
 0x786   :  { %2514 = vmatpush3.bf16.msra.mxu0 %v2513_v51 }
 0x787   :  { %2515 = vmatprep.subr.bf16.mxu0 %v2737_v30 }
 0x78a   :  { %2517 = vmatpush3.bf16.msra.mxu0 %v2516_v56 }
 0x840   :  { %v1665_v59 = vpop.f32.mrb[14].mxu0  ;;  %v1736_v50 = vpop.f32.mrb[22].mxu1 }
 0x841   :  { %v1745_v0 = vrot.slane %v1665_v59, 2  ;;  %v1667_v9 = vpop.f32.mrb[15].mxu0  ;;  %v1738_v13 = vpop.f32.mrb[23].mxu1  ;;  %v1747_v46 = vrot.slane %v1736_v50, 2 }
 0x842   :  { %v1746_v16 = vrot.slane %v1667_v9, 2  ;;  %v1748_v40 = vrot.slane %v1738_v13, 2 }
 0x843   :  { %v1753_v21 = vadd.f32 %v1745_v0, %v2962_v7  ;;  %v1755_v52 = vadd.f32 %v1747_v46, %v2966_v27 }
 0x844   :  { %v1754_v31 = vadd.f32 %v1746_v16, %v2964_v11  ;;  %v1756_v43 = vadd.f32 %v1748_v40, %v2968_v32 }
 0x845   :  { %v1926_v34 = vmul.f32 -1.442695, %v1753_v21 }
 0x846   :  { %v1927_v37 = vmul.f32 -1.442695, %v1754_v31  ;;  %v1928_v49 = vmul.f32 -1.442695, %v1756_v43 }
 0x847   :  { %2642 = vpow2.f32 %v1926_v34 }
 0x848   :  { %2644 = vpow2.f32 %v1927_v37 }
 0x849   :  { %2646 = vpow2.f32 %v1928_v49 }
 0x84a   :  { %2648 = vtanh.f32 %v1755_v52 }
 0x851   :  { %v2643_v55 = vpop.eup %2642 }
 0x852   :  { %v2645_v58 = vpop.eup %2644  ;;  %v1760_v61 = vadd.f32 1.0, %v2643_v55 }
 0x853   :  { %v1766_v1 = vadd.f32 1.0, %v2645_v58  ;;  %v2647_v7 = vpop.eup %2646 }
 0x854   :  { %2650 = vrcp.f32 %v1760_v61  ;;  %v2649_v11 = vpop.eup %2648  ;;  %v1773_v32 = vadd.f32 1.0, %v2647_v7 }
 0x855   :  { %2652 = vrcp.f32 %v1766_v1 }
 0x856   :  { %2654 = vrcp.f32 %v1773_v32 }
 0x85e   :  { %v2651_v4 = vpop.eup %2650 }
 0x85f   :  { %v2653_v12 = vpop.eup %2652  ;;  %v1780_v17 = vmul.f32 %v2651_v4, %v2649_v11 }
 0x860   :  { %v1779_v20 = vmul.f32 %v2653_v12, %v1777_v8  ;;  %v2655_v27 = vpop.eup %2654 }
 0x862   :  { %v1781_v24 = vadd.f32 %v1780_v17, %v1779_v20 }
 0x864   :  { %2656 = vtanh.f32 %v1781_v24 }
 0x86e   :  { %v2657_v28 = vpop.eup %2656 }
 0x86f   :  { %v1783_v29 = vmul.f32 %v2657_v28, %v2655_v27 }
 0x871   :  { %v1808_v33 = vrot.slane %v1783_v29, 6 }
 0x873   :  { %1980 = vmatmul.mubr.f32.vlgmr.msra.gmra.mrb[16].mxu0 %v1808_v33 }
 0x946   :  { %v1876_v39 = vpop.f32.mrb[16].mxu0 }
 0x947   :  { %v1877_v47 = vadd.f32 %v1929_v38, %v1876_v39  ;;  %v1981_v48 = vpop.f32.mrb[17].mxu0 }
 0x949   :  { %1880 = vst [vmem:[#allocation7] sm:$0x3] %v1877_v47 }
 0x94a   :  { %2713 = shalt.err (!%p2710_p6)
}
 0x94b   :  { %s2714_s13 = scalar_lea.hbm %s3262_s6, 32 }
 0x94c   :  { %p2715_p7 = scmp.ne.s32.totalorder %s3262_s6, %s2714_s13  ;;  %p2718_p8 = scmp.lt.u32.totalorder %s2714_s13, %s3262_s6 }
 0x94e   :  { %p2720_p9 = pnand %p2718_p8, %p2715_p7 }
 0x950   :  { %2723 = shalt.err (!%p2720_p9)
}
 0x951   :  { %1890 = dma.vmem_to_hbm [thread:$0]  %s1888_s9, 32, %s3262_s6, [#allocation4]  }
 0x952   :  { %2728 = dma.done.wait [#allocation4], 32  }
 0x953   :  { %2729 = vsyncadd [#allocation4], 4294967264 }
 0x954   :  { %1894 = vsyncpa [#allocation3], 1 }
 0x955   :  { %1895 = vsyncpa [#allocation6], 1 }
 0x956   :  { %1896 = vsyncpa [#allocation4], 1 }

</bundles_post_ra>
